<compile_context>
chip_gen: v7x
topology: tpu7x:2x2x1
jax: 0.10.0
libtpu: 0.0.40
codegen_flags: <defaults>
</compile_context>

<pallas_src>
import jax
import jax.numpy as jnp
from jax import lax
from jax.experimental import pallas as pl
from jax.experimental.pallas import tpu as pltpu

LN_EPS = 1e-5


def _round_up(x, m):
    return (x + m - 1) // m * m


def _physical_vmem_bytes():
    try:
        info = pltpu.get_tpu_info()
        for attr in ("vmem_capacity_bytes", "vmem_size_bytes"):
            v = getattr(info, attr, None)
            if v:
                return int(v)
    except Exception:
        pass
    return 64 * 1024 * 1024  # conservative default (v7x per-TensorCore VMEM)


def _tile_vmem_estimate(tile_n, c_pad, h_pad, w_bytes, io_bytes, weight_bufs=2):
    """Conservative per-core VMEM need (weights assumed double-buffered unless
    single-buffering is known to apply)."""
    weights = (c_pad * h_pad + h_pad * h_pad + h_pad * c_pad) * w_bytes * weight_bufs
    vectors = (4 * h_pad + c_pad) * 4 * weight_bufs
    io_tiles = 2 * 2 * tile_n * c_pad * io_bytes       # f + out, double-buffered
    acts = 4 * tile_n * max(h_pad, c_pad) * 4          # fp/ln/h/t live f32 temps
    return weights + vectors + io_tiles + acts


def _choose_tile_n(n, c_pad, h_pad, w_bytes, io_bytes, budget):
    """Pick the batch tile: >=2 grid steps whenever N allows (v7x megacore +
    DMA/compute pipelining), ~4 steps when the tiles stay large, and otherwise
    as big as the VMEM budget permits (amortizes per-grid-step overhead)."""
    cap = min(4096, _round_up(max(n, 1), 8))
    if n > 8:
        cap = min(cap, _round_up(pl.cdiv(n, 2), 8))        # at least 2 steps
    four_step = _round_up(pl.cdiv(n, 4), 8)
    if four_step >= 256:
        cap = min(cap, four_step)                          # ~4 steps if tiles stay big
    tile_n = max(8, cap)
    while tile_n > 8 and _tile_vmem_estimate(tile_n, c_pad, h_pad,
                                             w_bytes, io_bytes) > budget:
        tile_n = max(8, _round_up(tile_n // 2, 8))
    return tile_n


def _make_kernel(h_real):
    """Kernel factory; h_real is a Python int (closure constant)."""
    inv_h = 1.0 / float(h_real)

    def kernel(alpha_ref, f_ref, w1_ref, b1_ref, gamma_ref, beta_ref,
               w2_ref, b2_ref, w3_ref, b3_ref, out_ref):
        wdt = w1_ref.dtype                      # MXU operand dtype
        f_in = f_ref[...]                       # (TN, Cp), streamed io dtype
        f_mx = f_in.astype(wdt)                 # no-op when io dtype == weight dtype

        # fused first layer (== conv1x1 over the 5-way channel concat)
        fp = jnp.dot(f_mx, w1_ref[...],
                     preferred_element_type=jnp.float32) + b1_ref[...]   # (TN, Hp) f32

        # One-pass LayerNorm statistics over the real hidden width H.
        # Padded fp columns are exactly zero (zero-padded W1_eff columns and
        # b1_eff), so the unmasked row sums only see the H real columns.
        s1 = jnp.sum(fp, axis=-1, keepdims=True)
        s2 = jnp.sum(fp * fp, axis=-1, keepdims=True)
        mu = s1 * inv_h
        var = jnp.maximum(s2 * inv_h - mu * mu, 0.0)
        ln = (fp - mu) * lax.rsqrt(var + LN_EPS) * gamma_ref[...] + beta_ref[...]

        # MLP: Linear -> ReLU -> Linear
        h = jnp.dot(ln.astype(wdt), w2_ref[...],
                    preferred_element_type=jnp.float32) + b2_ref[...]
        h = jnp.maximum(h, 0.0)
        t = jnp.dot(h.astype(wdt), w3_ref[...],
                    preferred_element_type=jnp.float32) + b3_ref[...]    # (TN, Cp)

        # residual gate in f32; alpha comes from the SMEM scalar path and f is
        # upcast so the residual keeps full precision even with bf16 streams.
        alpha = alpha_ref[0, 0]
        res = alpha * t + (1.0 - alpha) * f_in.astype(jnp.float32)
        out_ref[...] = res.astype(out_ref.dtype)

    return kernel


def amrf_forward(f_roi, z, params, weight_dtype=jnp.bfloat16, io_dtype=None,
                 out_dtype=None, tile_n=None):
    """f_roi: (N, C, 1, 1), z: (1, C, 1, 1) -> (N, C, 1, 1).

    weight_dtype: MXU operand dtype of the resident weight matrices.
    io_dtype:     dtype of the streamed f tile (defaults to weight_dtype, so
                  the bf16 config halves HBM traffic of the batch stream).
    out_dtype:    output dtype (defaults to io_dtype).
    """
    if io_dtype is None:
        io_dtype = weight_dtype
    if out_dtype is None:
        out_dtype = io_dtype

    N, C = f_roi.shape[0], f_roi.shape[1]
    H = params["w1"].shape[0]

    f2d = f_roi.reshape(N, C)
    z2d = z.reshape(1, C).astype(jnp.float32)

    # ---- algebraic fold of the first layer (wrapper glue, O(C*H)) ----------
    w1 = params["w1"].reshape(H, 5 * C).astype(jnp.float32)
    w1a, w1b, w1c, w1d, w1e = [w1[:, i * C:(i + 1) * C] for i in range(5)]  # (H, C)
    w1_eff = (w1a + w1d + w1e).T + z2d.T * w1c.T                      # (C, H)
    b1_eff = params["b1"].reshape(1, H) + z2d @ w1b.T - z2d @ w1d.T   # (1, H)

    w2_t = params["w2"].T                                             # (H, H)
    b2 = params["b2"].reshape(1, H)
    w3_t = params["w3"].T                                             # (H, C)
    b3 = params["b3"].reshape(1, C)
    gamma = params["gamma"].reshape(1, H)
    beta = params["beta"].reshape(1, H)
    alpha = params["alpha"].reshape(1, 1).astype(jnp.float32)

    # ---- lane/sublane-friendly padding --------------------------------------
    c_pad = _round_up(C, 128)
    h_pad = _round_up(H, 128)
    w_bytes = jnp.dtype(weight_dtype).itemsize
    io_bytes = jnp.dtype(io_dtype).itemsize

    phys_vmem = _physical_vmem_bytes()
    budget = int(0.70 * phys_vmem)
    if tile_n is None:
        tile_n = _choose_tile_n(N, c_pad, h_pad, w_bytes, io_bytes, budget)
    assert tile_n % 8 == 0, "tile_n must be a sublane multiple (8)"

    # Rows are NOT padded to a tile multiple: the grid is cdiv(N, tile_n) and
    # Pallas handles the ragged last block (OOB stores are dropped; per-row
    # compute keeps garbage rows from contaminating valid ones).  Rows are
    # only rounded to a sublane multiple when a pad op already happens anyway
    # for the lane-dense column padding.
    if c_pad != C:
        n_src = _round_up(N, 8)
    elif N < 8:
        n_src = 8
    else:
        n_src = N
    tile_n = min(tile_n, _round_up(n_src, 8))

    f_io = f2d.astype(io_dtype)
    if n_src != N or c_pad != C:
        f_in = jnp.pad(f_io, ((0, n_src - N), (0, c_pad - C)))
    else:
        f_in = f_io

    def pad2(a, r, c):
        return jnp.pad(a, ((0, r - a.shape[0]), (0, c - a.shape[1])))

    w1_p = pad2(w1_eff, c_pad, h_pad).astype(weight_dtype)
    w2_p = pad2(w2_t, h_pad, h_pad).astype(weight_dtype)
    w3_p = pad2(w3_t, h_pad, c_pad).astype(weight_dtype)
    b1_p = pad2(b1_eff, 1, h_pad).astype(jnp.float32)
    b2_p = pad2(b2, 1, h_pad).astype(jnp.float32)
    b3_p = pad2(b3, 1, c_pad).astype(jnp.float32)
    gamma_p = pad2(gamma, 1, h_pad).astype(jnp.float32)
    beta_p = pad2(beta, 1, h_pad).astype(jnp.float32)

    grid = (pl.cdiv(n_src, tile_n),)
    need = _tile_vmem_estimate(tile_n, c_pad, h_pad, w_bytes, io_bytes,
                               weight_bufs=2)
    vmem_limit = int(min(phys_vmem, max(32 * 1024 * 1024,
                                        need + 16 * 1024 * 1024)))

    kernel = _make_kernel(H)
    operands = (alpha, f_in, w1_p, b1_p, gamma_p, beta_p, w2_p, b2_p, w3_p, b3_p)

    def _invoke(single_buffer_weights):
        wkw = {}
        if single_buffer_weights and hasattr(pl, "Buffered"):
            # Constant-index blocks never change across grid steps: one VMEM
            # buffer is enough (halves resident-weight VMEM).
            wkw = dict(pipeline_mode=pl.Buffered(1))
        const2 = lambda i: (0, 0)
        row_map = lambda i: (i, 0)
        in_specs = [
            pl.BlockSpec(memory_space=pltpu.MemorySpace.SMEM),          # alpha (1,1)
            pl.BlockSpec((tile_n, c_pad), row_map),                     # f (streamed)
            pl.BlockSpec((c_pad, h_pad), const2, **wkw),                # W1_eff
            pl.BlockSpec((1, h_pad), const2, **wkw),                    # b1_eff
            pl.BlockSpec((1, h_pad), const2, **wkw),                    # gamma
            pl.BlockSpec((1, h_pad), const2, **wkw),                    # beta
            pl.BlockSpec((h_pad, h_pad), const2, **wkw),                # W2^T
            pl.BlockSpec((1, h_pad), const2, **wkw),                    # b2
            pl.BlockSpec((h_pad, c_pad), const2, **wkw),                # W3^T
            pl.BlockSpec((1, c_pad), const2, **wkw),                    # b3
        ]
        out_specs = pl.BlockSpec((tile_n, c_pad), row_map)
        return pl.pallas_call(
            kernel,
            out_shape=jax.ShapeDtypeStruct((n_src, c_pad), out_dtype),
            grid_spec=pltpu.PrefetchScalarGridSpec(
                num_scalar_prefetch=0,
                grid=grid,
                in_specs=in_specs,
                out_specs=out_specs,
            ),
            compiler_params=pltpu.CompilerParams(
                dimension_semantics=("parallel",),
                vmem_limit_bytes=vmem_limit,
            ),
        )(*operands)

    try:
        out_p = _invoke(True)
    except Exception:
        # Fallback if this Pallas version does not honor pipeline_mode on the
        # top-level pallas_call: default (double) buffering is always valid.
        out_p = _invoke(False)

    return out_p[:N, :C].reshape(N, C, 1, 1)


def amrf_reference(f_roi, z, params):
    """Pure-JAX reference mirroring the PyTorch module literally."""
    N, C = f_roi.shape[0], f_roi.shape[1]
    H = params["w1"].shape[0]
    f2d = f_roi.reshape(N, C)
    z2d = z.reshape(1, C)

    prod = f_roi * z
    diff = f_roi - z
    wa_z = z2d @ params["wa"].T                        # (1, C)
    logits = f2d @ wa_z.T                              # (N, 1)
    attn_w = jax.nn.softmax(logits, axis=-1)           # identically 1.0
    attn = attn_w[:, :, None, None] * f_roi
    z_exp = jnp.broadcast_to(z, f_roi.shape)
    concat = jnp.concatenate([f_roi, z_exp, prod, diff, attn], axis=1)
    x = concat.reshape(N, 5 * C)
    f_prime = x @ params["w1"].reshape(H, 5 * C).T + params["b1"]
    mu = jnp.mean(f_prime, axis=-1, keepdims=True)
    var = jnp.mean((f_prime - mu) ** 2, axis=-1, keepdims=True)
    ln = (f_prime - mu) / jnp.sqrt(var + LN_EPS) * params["gamma"] + params["beta"]
    h = jnp.maximum(ln @ params["w2"].T + params["b2"], 0.0)
    t = h @ params["w3"].T + params["b3"]
    a = params["alpha"]
    return a * t[:, :, None, None] + (1.0 - a) * f_roi


def init_params(key, input_dim, hidden_dim):
    ks = jax.random.split(key, 6)
    s = 0.1
    return {
        "w1":    s * jax.random.normal(ks[0], (hidden_dim, input_dim * 5, 1, 1), jnp.float32),
        "b1":    s * jax.random.normal(ks[1], (hidden_dim,), jnp.float32),
        "w2":    s * jax.random.normal(ks[2], (hidden_dim, hidden_dim), jnp.float32),
        "b2":    jnp.zeros((hidden_dim,), jnp.float32),
        "w3":    s * jax.random.normal(ks[3], (input_dim, hidden_dim), jnp.float32),
        "b3":    jnp.zeros((input_dim,), jnp.float32),
        "wa":    s * jax.random.normal(ks[4], (input_dim, input_dim), jnp.float32),
        "alpha": jnp.asarray(0.5, jnp.float32),
        "gamma": jnp.ones((hidden_dim,), jnp.float32),
        "beta":  jnp.zeros((hidden_dim,), jnp.float32),
    }


if __name__ == "__main__":
    N, input_dim, hidden_dim = 20, 16, 32

    key = jax.random.PRNGKey(0)
    k_f, k_z, k_p = jax.random.split(key, 3)
    f_roi = jax.random.normal(k_f, (N, input_dim, 1, 1), jnp.float32)
    z = jax.random.normal(k_z, (1, input_dim, 1, 1), jnp.float32)
    params = init_params(k_p, input_dim, hidden_dim)

    ref = amrf_reference(f_roi, z, params)

    # 1) f32 weights + f32 streams, forced small tile: exercises the
    #    multi-step pipelined grid (3 steps) and the C/H lane padding; must
    #    match the literal reference tightly.
    out_f32 = amrf_forward(f_roi, z, params, weight_dtype=jnp.float32, tile_n=8)
    out_f32 = jax.block_until_ready(out_f32)
    assert out_f32.shape == (N, input_dim, 1, 1)
    assert jnp.allclose(out_f32, ref, atol=1e-4, rtol=1e-4), "f32 kernel mismatch"

    # 2) performance configuration: bf16 MXU weights + bf16 streamed f/out
    #    tiles (f32 accumulation + f32 residual in-kernel), auto tile size
    #    with >=2 grid steps and a ragged last block.  Looser tolerance only
    #    because of bf16 quantization of weights / streams / output.
    out_bf16 = amrf_forward(f_roi, z, params)
    out_bf16 = jax.block_until_ready(out_bf16)
    assert out_bf16.shape == (N, input_dim, 1, 1)
    assert jnp.allclose(out_bf16.astype(jnp.float32), ref, atol=3e-2, rtol=3e-2), \
        "bf16 kernel mismatch"

    print("KERNEL_OK")
</pallas_src>

<mosaic_0001>
module attributes {stable_mosaic.version = 11 : i64} {
  func.func @kernel(%arg0: i32, %arg1: memref<1x1xf32, #tpu.memory_space<smem>>, %arg2: memref<8x128xf32, #tpu.memory_space<vmem>>, %arg3: memref<128x128xf32, #tpu.memory_space<vmem>>, %arg4: memref<1x128xf32, #tpu.memory_space<vmem>>, %arg5: memref<1x128xf32, #tpu.memory_space<vmem>>, %arg6: memref<1x128xf32, #tpu.memory_space<vmem>>, %arg7: memref<128x128xf32, #tpu.memory_space<vmem>>, %arg8: memref<1x128xf32, #tpu.memory_space<vmem>>, %arg9: memref<128x128xf32, #tpu.memory_space<vmem>>, %arg10: memref<1x128xf32, #tpu.memory_space<vmem>>, %arg11: memref<8x128xf32, #tpu.memory_space<vmem>>) attributes {dimension_semantics = [#tpu.dimension_semantics<parallel>], iteration_bounds = array<i64: 3>, scalar_prefetch = 0 : i64, scratch_operands = 0 : i64, tpu.core_type = #tpu.core_type<tc>, window_params = [{transform_indices = @transform_0, window_bounds = array<i64: 1, 1>}, {transform_indices = @transform_1, window_bounds = array<i64: 8, 128>}, {pipeline_mode = #tpu.pipeline_mode<synchronous>, transform_indices = @transform_2, window_bounds = array<i64: 128, 128>}, {pipeline_mode = #tpu.pipeline_mode<synchronous>, transform_indices = @transform_3, window_bounds = array<i64: 1, 128>}, {pipeline_mode = #tpu.pipeline_mode<synchronous>, transform_indices = @transform_4, window_bounds = array<i64: 1, 128>}, {pipeline_mode = #tpu.pipeline_mode<synchronous>, transform_indices = @transform_5, window_bounds = array<i64: 1, 128>}, {pipeline_mode = #tpu.pipeline_mode<synchronous>, transform_indices = @transform_6, window_bounds = array<i64: 128, 128>}, {pipeline_mode = #tpu.pipeline_mode<synchronous>, transform_indices = @transform_7, window_bounds = array<i64: 1, 128>}, {pipeline_mode = #tpu.pipeline_mode<synchronous>, transform_indices = @transform_8, window_bounds = array<i64: 128, 128>}, {pipeline_mode = #tpu.pipeline_mode<synchronous>, transform_indices = @transform_9, window_bounds = array<i64: 1, 128>}, {transform_indices = @transform_10, window_bounds = array<i64: 8, 128>}]} {
    %c0 = arith.constant 0 : index
    %c0_0 = arith.constant 0 : index
    %0 = vector.load %arg2[%c0, %c0_0] : memref<8x128xf32, #tpu.memory_space<vmem>>, vector<8x128xf32>
    %c0_1 = arith.constant 0 : index
    %c0_2 = arith.constant 0 : index
    %1 = vector.load %arg3[%c0_1, %c0_2] : memref<128x128xf32, #tpu.memory_space<vmem>>, vector<128x128xf32>
    %cst = arith.constant dense<0.000000e+00> : vector<8x128xf32>
    %2 = tpu.matmul %0, %1, %cst {dimension_numbers = #tpu.dot_dimension_numbers<[1], [0], [0], [1], [0, 0, 1, 1], [], []>} : vector<8x128xf32>, vector<128x128xf32>, vector<8x128xf32> -> vector<8x128xf32>
    %c0_3 = arith.constant 0 : index
    %c0_4 = arith.constant 0 : index
    %3 = vector.load %arg4[%c0_3, %c0_4] : memref<1x128xf32, #tpu.memory_space<vmem>>, vector<1x128xf32>
    %4 = vector.broadcast %3 : vector<1x128xf32> to vector<8x128xf32>
    %5 = arith.addf %2, %4 : vector<8x128xf32>
    %cst_5 = arith.constant dense<0.000000e+00> : vector<8xf32>
    %6 = vector.multi_reduction <add>, %5, %cst_5 [1] : vector<8x128xf32> to vector<8xf32>
    %7 = vector.shape_cast %6 : vector<8xf32> to vector<8x1xf32>
    %8 = arith.mulf %5, %5 : vector<8x128xf32>
    %cst_6 = arith.constant dense<0.000000e+00> : vector<8xf32>
    %9 = vector.multi_reduction <add>, %8, %cst_6 [1] : vector<8x128xf32> to vector<8xf32>
    %10 = vector.shape_cast %9 : vector<8xf32> to vector<8x1xf32>
    %cst_7 = arith.constant 3.125000e-02 : f32
    %11 = vector.broadcast %cst_7 : f32 to vector<8x1xf32>
    %12 = arith.mulf %7, %11 : vector<8x1xf32>
    %cst_8 = arith.constant 3.125000e-02 : f32
    %13 = vector.broadcast %cst_8 : f32 to vector<8x1xf32>
    %14 = arith.mulf %10, %13 : vector<8x1xf32>
    %15 = arith.mulf %12, %12 : vector<8x1xf32>
    %16 = arith.subf %14, %15 : vector<8x1xf32>
    %cst_9 = arith.constant 0.000000e+00 : f32
    %17 = vector.broadcast %cst_9 : f32 to vector<8x1xf32>
    %18 = arith.maximumf %16, %17 : vector<8x1xf32>
    %19 = vector.broadcast %12 : vector<8x1xf32> to vector<8x128xf32>
    %20 = arith.subf %5, %19 : vector<8x128xf32>
    %cst_10 = arith.constant 9.99999974E-6 : f32
    %21 = vector.broadcast %cst_10 : f32 to vector<8x1xf32>
    %22 = arith.addf %18, %21 : vector<8x1xf32>
    %23 = math.rsqrt %22 : vector<8x1xf32>
    %24 = vector.broadcast %23 : vector<8x1xf32> to vector<8x128xf32>
    %25 = arith.mulf %20, %24 : vector<8x128xf32>
    %c0_11 = arith.constant 0 : index
    %c0_12 = arith.constant 0 : index
    %26 = vector.load %arg5[%c0_11, %c0_12] : memref<1x128xf32, #tpu.memory_space<vmem>>, vector<1x128xf32>
    %27 = vector.broadcast %26 : vector<1x128xf32> to vector<8x128xf32>
    %28 = arith.mulf %25, %27 : vector<8x128xf32>
    %c0_13 = arith.constant 0 : index
    %c0_14 = arith.constant 0 : index
    %29 = vector.load %arg6[%c0_13, %c0_14] : memref<1x128xf32, #tpu.memory_space<vmem>>, vector<1x128xf32>
    %30 = vector.broadcast %29 : vector<1x128xf32> to vector<8x128xf32>
    %31 = arith.addf %28, %30 : vector<8x128xf32>
    %c0_15 = arith.constant 0 : index
    %c0_16 = arith.constant 0 : index
    %32 = vector.load %arg7[%c0_15, %c0_16] : memref<128x128xf32, #tpu.memory_space<vmem>>, vector<128x128xf32>
    %cst_17 = arith.constant dense<0.000000e+00> : vector<8x128xf32>
    %33 = tpu.matmul %31, %32, %cst_17 {dimension_numbers = #tpu.dot_dimension_numbers<[1], [0], [0], [1], [0, 0, 1, 1], [], []>} : vector<8x128xf32>, vector<128x128xf32>, vector<8x128xf32> -> vector<8x128xf32>
    %c0_18 = arith.constant 0 : index
    %c0_19 = arith.constant 0 : index
    %34 = vector.load %arg8[%c0_18, %c0_19] : memref<1x128xf32, #tpu.memory_space<vmem>>, vector<1x128xf32>
    %35 = vector.broadcast %34 : vector<1x128xf32> to vector<8x128xf32>
    %36 = arith.addf %33, %35 : vector<8x128xf32>
    %cst_20 = arith.constant 0.000000e+00 : f32
    %37 = vector.broadcast %cst_20 : f32 to vector<8x128xf32>
    %38 = arith.maximumf %36, %37 : vector<8x128xf32>
    %c0_21 = arith.constant 0 : index
    %c0_22 = arith.constant 0 : index
    %39 = vector.load %arg9[%c0_21, %c0_22] : memref<128x128xf32, #tpu.memory_space<vmem>>, vector<128x128xf32>
    %cst_23 = arith.constant dense<0.000000e+00> : vector<8x128xf32>
    %40 = tpu.matmul %38, %39, %cst_23 {dimension_numbers = #tpu.dot_dimension_numbers<[1], [0], [0], [1], [0, 0, 1, 1], [], []>} : vector<8x128xf32>, vector<128x128xf32>, vector<8x128xf32> -> vector<8x128xf32>
    %c0_24 = arith.constant 0 : index
    %c0_25 = arith.constant 0 : index
    %41 = vector.load %arg10[%c0_24, %c0_25] : memref<1x128xf32, #tpu.memory_space<vmem>>, vector<1x128xf32>
    %42 = vector.broadcast %41 : vector<1x128xf32> to vector<8x128xf32>
    %43 = arith.addf %40, %42 : vector<8x128xf32>
    %c0_26 = arith.constant 0 : index
    %c0_27 = arith.constant 0 : index
    %44 = memref.load %arg1[%c0_26, %c0_27] : memref<1x1xf32, #tpu.memory_space<smem>>
    %45 = vector.broadcast %44 : f32 to vector<8x128xf32>
    %46 = arith.mulf %45, %43 : vector<8x128xf32>
    %cst_28 = arith.constant 1.000000e+00 : f32
    %47 = arith.subf %cst_28, %44 : f32
    %48 = vector.broadcast %47 : f32 to vector<8x128xf32>
    %49 = arith.mulf %48, %0 : vector<8x128xf32>
    %50 = arith.addf %46, %49 : vector<8x128xf32>
    %c0_29 = arith.constant 0 : index
    %c0_30 = arith.constant 0 : index
    %51 = vector.load %arg11[%c0_29, %c0_30] : memref<8x128xf32, #tpu.memory_space<vmem>>, vector<8x128xf32>
    tpu.vector_store %arg11[%c0_29, %c0_30], %50 {strides = array<i32>} : memref<8x128xf32, #tpu.memory_space<vmem>>, vector<8x128xf32>,
    return
  }
  func.func @transform_0(%arg0: i32) -> (i32, i32) {
    %c0_i32 = arith.constant 0 : i32
    %c0_i32_0 = arith.constant 0 : i32
    %c0_i32_1 = arith.constant 0 : i32
    return %c0_i32, %c0_i32_0 : i32, i32
  }
  func.func @transform_1(%arg0: i32) -> (i32, i32) {
    %c0_i32 = arith.constant 0 : i32
    %c0_i32_0 = arith.constant 0 : i32
    return %arg0, %c0_i32 : i32, i32
  }
  func.func @transform_2(%arg0: i32) -> (i32, i32) {
    %c0_i32 = arith.constant 0 : i32
    %c0_i32_0 = arith.constant 0 : i32
    %c0_i32_1 = arith.constant 0 : i32
    return %c0_i32, %c0_i32_0 : i32, i32
  }
  func.func @transform_3(%arg0: i32) -> (i32, i32) {
    %c0_i32 = arith.constant 0 : i32
    %c0_i32_0 = arith.constant 0 : i32
    %c0_i32_1 = arith.constant 0 : i32
    return %c0_i32, %c0_i32_0 : i32, i32
  }
  func.func @transform_4(%arg0: i32) -> (i32, i32) {
    %c0_i32 = arith.constant 0 : i32
    %c0_i32_0 = arith.constant 0 : i32
    %c0_i32_1 = arith.constant 0 : i32
    return %c0_i32, %c0_i32_0 : i32, i32
  }
  func.func @transform_5(%arg0: i32) -> (i32, i32) {
    %c0_i32 = arith.constant 0 : i32
    %c0_i32_0 = arith.constant 0 : i32
    %c0_i32_1 = arith.constant 0 : i32
    return %c0_i32, %c0_i32_0 : i32, i32
  }
  func.func @transform_6(%arg0: i32) -> (i32, i32) {
    %c0_i32 = arith.constant 0 : i32
    %c0_i32_0 = arith.constant 0 : i32
    %c0_i32_1 = arith.constant 0 : i32
    return %c0_i32, %c0_i32_0 : i32, i32
  }
  func.func @transform_7(%arg0: i32) -> (i32, i32) {
    %c0_i32 = arith.constant 0 : i32
    %c0_i32_0 = arith.constant 0 : i32
    %c0_i32_1 = arith.constant 0 : i32
    return %c0_i32, %c0_i32_0 : i32, i32
  }
  func.func @transform_8(%arg0: i32) -> (i32, i32) {
    %c0_i32 = arith.constant 0 : i32
    %c0_i32_0 = arith.constant 0 : i32
    %c0_i32_1 = arith.constant 0 : i32
    return %c0_i32, %c0_i32_0 : i32, i32
  }
  func.func @transform_9(%arg0: i32) -> (i32, i32) {
    %c0_i32 = arith.constant 0 : i32
    %c0_i32_0 = arith.constant 0 : i32
    %c0_i32_1 = arith.constant 0 : i32
    return %c0_i32, %c0_i32_0 : i32, i32
  }
  func.func @transform_10(%arg0: i32) -> (i32, i32) {
    %c0_i32 = arith.constant 0 : i32
    %c0_i32_0 = arith.constant 0 : i32
    return %arg0, %c0_i32 : i32, i32
  }
}

module attributes {stable_mosaic.version = 11 : i64} {
  func.func @kernel(%arg0: i32, %arg1: memref<1x1xf32, #tpu.memory_space<smem>>, %arg2: memref<8x128xf32, #tpu.memory_space<vmem>>, %arg3: memref<128x128xf32, #tpu.memory_space<vmem>>, %arg4: memref<1x128xf32, #tpu.memory_space<vmem>>, %arg5: memref<1x128xf32, #tpu.memory_space<vmem>>, %arg6: memref<1x128xf32, #tpu.memory_space<vmem>>, %arg7: memref<128x128xf32, #tpu.memory_space<vmem>>, %arg8: memref<1x128xf32, #tpu.memory_space<vmem>>, %arg9: memref<128x128xf32, #tpu.memory_space<vmem>>, %arg10: memref<1x128xf32, #tpu.memory_space<vmem>>, %arg11: memref<8x128xf32, #tpu.memory_space<vmem>>) attributes {dimension_semantics = [#tpu.dimension_semantics<parallel>], iteration_bounds = array<i64: 3>, scalar_prefetch = 0 : i64, scratch_operands = 0 : i64, tpu.core_type = #tpu.core_type<tc>, window_params = [{transform_indices = @transform_0, window_bounds = array<i64: 1, 1>}, {transform_indices = @transform_1, window_bounds = array<i64: 8, 128>}, {pipeline_mode = #tpu.pipeline_mode<synchronous>, transform_indices = @transform_2, window_bounds = array<i64: 128, 128>}, {pipeline_mode = #tpu.pipeline_mode<synchronous>, transform_indices = @transform_3, window_bounds = array<i64: 1, 128>}, {pipeline_mode = #tpu.pipeline_mode<synchronous>, transform_indices = @transform_4, window_bounds = array<i64: 1, 128>}, {pipeline_mode = #tpu.pipeline_mode<synchronous>, transform_indices = @transform_5, window_bounds = array<i64: 1, 128>}, {pipeline_mode = #tpu.pipeline_mode<synchronous>, transform_indices = @transform_6, window_bounds = array<i64: 128, 128>}, {pipeline_mode = #tpu.pipeline_mode<synchronous>, transform_indices = @transform_7, window_bounds = array<i64: 1, 128>}, {pipeline_mode = #tpu.pipeline_mode<synchronous>, transform_indices = @transform_8, window_bounds = array<i64: 128, 128>}, {pipeline_mode = #tpu.pipeline_mode<synchronous>, transform_indices = @transform_9, window_bounds = array<i64: 1, 128>}, {transform_indices = @transform_10, window_bounds = array<i64: 8, 128>}]} {
    %c0 = arith.constant 0 : index
    %c0_0 = arith.constant 0 : index
    %0 = vector.load %arg2[%c0, %c0_0] : memref<8x128xf32, #tpu.memory_space<vmem>>, vector<8x128xf32>
    %c0_1 = arith.constant 0 : index
    %c0_2 = arith.constant 0 : index
    %1 = vector.load %arg3[%c0_1, %c0_2] : memref<128x128xf32, #tpu.memory_space<vmem>>, vector<128x128xf32>
    %cst = arith.constant dense<0.000000e+00> : vector<8x128xf32>
    %2 = tpu.matmul %0, %1, %cst {dimension_numbers = #tpu.dot_dimension_numbers<[1], [0], [0], [1], [0, 0, 1, 1], [], []>} : vector<8x128xf32>, vector<128x128xf32>, vector<8x128xf32> -> vector<8x128xf32>
    %c0_3 = arith.constant 0 : index
    %c0_4 = arith.constant 0 : index
    %3 = vector.load %arg4[%c0_3, %c0_4] : memref<1x128xf32, #tpu.memory_space<vmem>>, vector<1x128xf32>
    %4 = vector.broadcast %3 : vector<1x128xf32> to vector<8x128xf32>
    %5 = arith.addf %2, %4 : vector<8x128xf32>
    %cst_5 = arith.constant dense<0.000000e+00> : vector<8xf32>
    %6 = vector.multi_reduction <add>, %5, %cst_5 [1] : vector<8x128xf32> to vector<8xf32>
    %7 = vector.shape_cast %6 : vector<8xf32> to vector<8x1xf32>
    %8 = arith.mulf %5, %5 : vector<8x128xf32>
    %cst_6 = arith.constant dense<0.000000e+00> : vector<8xf32>
    %9 = vector.multi_reduction <add>, %8, %cst_6 [1] : vector<8x128xf32> to vector<8xf32>
    %10 = vector.shape_cast %9 : vector<8xf32> to vector<8x1xf32>
    %cst_7 = arith.constant 3.125000e-02 : f32
    %11 = vector.broadcast %cst_7 : f32 to vector<8x1xf32>
    %12 = arith.mulf %7, %11 : vector<8x1xf32>
    %cst_8 = arith.constant 3.125000e-02 : f32
    %13 = vector.broadcast %cst_8 : f32 to vector<8x1xf32>
    %14 = arith.mulf %10, %13 : vector<8x1xf32>
    %15 = arith.mulf %12, %12 : vector<8x1xf32>
    %16 = arith.subf %14, %15 : vector<8x1xf32>
    %cst_9 = arith.constant 0.000000e+00 : f32
    %17 = vector.broadcast %cst_9 : f32 to vector<8x1xf32>
    %18 = arith.maximumf %16, %17 : vector<8x1xf32>
    %19 = vector.broadcast %12 : vector<8x1xf32> to vector<8x128xf32>
    %20 = arith.subf %5, %19 : vector<8x128xf32>
    %cst_10 = arith.constant 9.99999974E-6 : f32
    %21 = vector.broadcast %cst_10 : f32 to vector<8x1xf32>
    %22 = arith.addf %18, %21 : vector<8x1xf32>
    %23 = math.rsqrt %22 : vector<8x1xf32>
    %24 = vector.broadcast %23 : vector<8x1xf32> to vector<8x128xf32>
    %25 = arith.mulf %20, %24 : vector<8x128xf32>
    %c0_11 = arith.constant 0 : index
    %c0_12 = arith.constant 0 : index
    %26 = vector.load %arg5[%c0_11, %c0_12] : memref<1x128xf32, #tpu.memory_space<vmem>>, vector<1x128xf32>
    %27 = vector.broadcast %26 : vector<1x128xf32> to vector<8x128xf32>
    %28 = arith.mulf %25, %27 : vector<8x128xf32>
    %c0_13 = arith.constant 0 : index
    %c0_14 = arith.constant 0 : index
    %29 = vector.load %arg6[%c0_13, %c0_14] : memref<1x128xf32, #tpu.memory_space<vmem>>, vector<1x128xf32>
    %30 = vector.broadcast %29 : vector<1x128xf32> to vector<8x128xf32>
    %31 = arith.addf %28, %30 : vector<8x128xf32>
    %c0_15 = arith.constant 0 : index
    %c0_16 = arith.constant 0 : index
    %32 = vector.load %arg7[%c0_15, %c0_16] : memref<128x128xf32, #tpu.memory_space<vmem>>, vector<128x128xf32>
    %cst_17 = arith.constant dense<0.000000e+00> : vector<8x128xf32>
    %33 = tpu.matmul %31, %32, %cst_17 {dimension_numbers = #tpu.dot_dimension_numbers<[1], [0], [0], [1], [0, 0, 1, 1], [], []>} : vector<8x128xf32>, vector<128x128xf32>, vector<8x128xf32> -> vector<8x128xf32>
    %c0_18 = arith.constant 0 : index
    %c0_19 = arith.constant 0 : index
    %34 = vector.load %arg8[%c0_18, %c0_19] : memref<1x128xf32, #tpu.memory_space<vmem>>, vector<1x128xf32>
    %35 = vector.broadcast %34 : vector<1x128xf32> to vector<8x128xf32>
    %36 = arith.addf %33, %35 : vector<8x128xf32>
    %cst_20 = arith.constant 0.000000e+00 : f32
    %37 = vector.broadcast %cst_20 : f32 to vector<8x128xf32>
    %38 = arith.maximumf %36, %37 : vector<8x128xf32>
    %c0_21 = arith.constant 0 : index
    %c0_22 = arith.constant 0 : index
    %39 = vector.load %arg9[%c0_21, %c0_22] : memref<128x128xf32, #tpu.memory_space<vmem>>, vector<128x128xf32>
    %cst_23 = arith.constant dense<0.000000e+00> : vector<8x128xf32>
    %40 = tpu.matmul %38, %39, %cst_23 {dimension_numbers = #tpu.dot_dimension_numbers<[1], [0], [0], [1], [0, 0, 1, 1], [], []>} : vector<8x128xf32>, vector<128x128xf32>, vector<8x128xf32> -> vector<8x128xf32>
    %c0_24 = arith.constant 0 : index
    %c0_25 = arith.constant 0 : index
    %41 = vector.load %arg10[%c0_24, %c0_25] : memref<1x128xf32, #tpu.memory_space<vmem>>, vector<1x128xf32>
    %42 = vector.broadcast %41 : vector<1x128xf32> to vector<8x128xf32>
    %43 = arith.addf %40, %42 : vector<8x128xf32>
    %c0_26 = arith.constant 0 : index
    %c0_27 = arith.constant 0 : index
    %44 = memref.load %arg1[%c0_26, %c0_27] : memref<1x1xf32, #tpu.memory_space<smem>>
    %45 = vector.broadcast %44 : f32 to vector<8x128xf32>
    %46 = arith.mulf %45, %43 : vector<8x128xf32>
    %cst_28 = arith.constant 1.000000e+00 : f32
    %47 = arith.subf %cst_28, %44 : f32
    %48 = vector.broadcast %47 : f32 to vector<8x128xf32>
    %49 = arith.mulf %48, %0 : vector<8x128xf32>
    %50 = arith.addf %46, %49 : vector<8x128xf32>
    %c0_29 = arith.constant 0 : index
    %c0_30 = arith.constant 0 : index
    %51 = vector.load %arg11[%c0_29, %c0_30] : memref<8x128xf32, #tpu.memory_space<vmem>>, vector<8x128xf32>
    tpu.vector_store %arg11[%c0_29, %c0_30], %50 {strides = array<i32>} : memref<8x128xf32, #tpu.memory_space<vmem>>, vector<8x128xf32>,
    return
  }
  func.func @transform_0(%arg0: i32) -> (i32, i32) {
    %c0_i32 = arith.constant 0 : i32
    %c0_i32_0 = arith.constant 0 : i32
    %c0_i32_1 = arith.constant 0 : i32
    return %c0_i32, %c0_i32_0 : i32, i32
  }
  func.func @transform_1(%arg0: i32) -> (i32, i32) {
    %c0_i32 = arith.constant 0 : i32
    %c0_i32_0 = arith.constant 0 : i32
    return %arg0, %c0_i32 : i32, i32
  }
  func.func @transform_2(%arg0: i32) -> (i32, i32) {
    %c0_i32 = arith.constant 0 : i32
    %c0_i32_0 = arith.constant 0 : i32
    %c0_i32_1 = arith.constant 0 : i32
    return %c0_i32, %c0_i32_0 : i32, i32
  }
  func.func @transform_3(%arg0: i32) -> (i32, i32) {
    %c0_i32 = arith.constant 0 : i32
    %c0_i32_0 = arith.constant 0 : i32
    %c0_i32_1 = arith.constant 0 : i32
    return %c0_i32, %c0_i32_0 : i32, i32
  }
  func.func @transform_4(%arg0: i32) -> (i32, i32) {
    %c0_i32 = arith.constant 0 : i32
    %c0_i32_0 = arith.constant 0 : i32
    %c0_i32_1 = arith.constant 0 : i32
    return %c0_i32, %c0_i32_0 : i32, i32
  }
  func.func @transform_5(%arg0: i32) -> (i32, i32) {
    %c0_i32 = arith.constant 0 : i32
    %c0_i32_0 = arith.constant 0 : i32
    %c0_i32_1 = arith.constant 0 : i32
    return %c0_i32, %c0_i32_0 : i32, i32
  }
  func.func @transform_6(%arg0: i32) -> (i32, i32) {
    %c0_i32 = arith.constant 0 : i32
    %c0_i32_0 = arith.constant 0 : i32
    %c0_i32_1 = arith.constant 0 : i32
    return %c0_i32, %c0_i32_0 : i32, i32
  }
  func.func @transform_7(%arg0: i32) -> (i32, i32) {
    %c0_i32 = arith.constant 0 : i32
    %c0_i32_0 = arith.constant 0 : i32
    %c0_i32_1 = arith.constant 0 : i32
    return %c0_i32, %c0_i32_0 : i32, i32
  }
  func.func @transform_8(%arg0: i32) -> (i32, i32) {
    %c0_i32 = arith.constant 0 : i32
    %c0_i32_0 = arith.constant 0 : i32
    %c0_i32_1 = arith.constant 0 : i32
    return %c0_i32, %c0_i32_0 : i32, i32
  }
  func.func @transform_9(%arg0: i32) -> (i32, i32) {
    %c0_i32 = arith.constant 0 : i32
    %c0_i32_0 = arith.constant 0 : i32
    %c0_i32_1 = arith.constant 0 : i32
    return %c0_i32, %c0_i32_0 : i32, i32
  }
  func.func @transform_10(%arg0: i32) -> (i32, i32) {
    %c0_i32 = arith.constant 0 : i32
    %c0_i32_0 = arith.constant 0 : i32
    return %arg0, %c0_i32 : i32, i32
  }
}

</mosaic_0001>

<bundles_post_ra>
// kernel: tpu_custom_call.1
= control target key start
LH: loop header
LB: loop body
LE: loop exit
PB: predicated region body
PF: predicated region fallthrough
CT: control target
= control target key end

     0   :  { %s1765_s0 = inlined_call_operand.<no memory space> [shape: f32[1,1], index: 0, kind: input, shape index: {}]   ;;  %s1766_s1 = inlined_call_operand.hbm [shape: f32[24,128], index: 1, kind: input, shape index: {}]   ;;  %s1767_s2 = inlined_call_operand.hbm [shape: f32[128,128], index: 2, kind: input, shape index: {}]   ;;  %s1768_s3 = inlined_call_operand.vmem [shape: f32[1,128], index: 3, kind: input, shape index: {}]   ;;  %s1769_s4 = inlined_call_operand.vmem [shape: f32[1,128], index: 4, kind: input, shape index: {}]   ;;  %s1770_s5 = inlined_call_operand.vmem [shape: f32[1,128], index: 5, kind: input, shape index: {}]   ;;  %s1771_s6 = inlined_call_operand.hbm [shape: f32[128,128], index: 6, kind: input, shape index: {}]   ;;  %s1772_s7 = inlined_call_operand.vmem [shape: f32[1,128], index: 7, kind: input, shape index: {}]   ;;  %s1773_s8 = inlined_call_operand.hbm [shape: f32[128,128], index: 8, kind: input, shape index: {}]   ;;  %s1774_s9 = inlined_call_operand.vmem [shape: f32[1,128], index: 9, kind: input, shape index: {}]   ;;  %s1775_s10 = inlined_call_operand.hbm [shape: f32[24,128], index: 10, kind: output, shape index: {}]  }
   0x1   :  { %1782 = sst [smem:[#allocation18_spill]] %s1775_s10 }
   0x2   :  { %15 = sst [smem:[#allocation2]] %s1765_s0 }
   0x3   :  { %16 = vsyncpa [#allocation4], 0 }
   0x4   :  { %18 = vsyncpa [#allocation4 + $0x1], 0 }
   0x5   :  { %19 = vsyncpa [#allocation7], 0 }
   0x6   :  { %20 = vsyncpa [#allocation10], 0 }
   0x7   :  { %21 = vsyncpa [#allocation5], 0 }
   0x8   :  { %23 = vsyncpa [#allocation5 + $0x1], 0  ;;  %s1445_s15 = smov 0   ;;  %s1447_s16 = smov 0  }
   0x9   :  { %s1449_s17 = smov 0   ;;  %s1451_s18 = smov 0  }
   0xa LB: > { %1783 = sst [smem:[#allocation16_spill]] %s1363_s15  ;;  %s1466_s0 = sadd.s32 4294967295, %s1375_s18   ;;  %s1375_s18 = sphi %s1451_s18, %s1806_s18   ;;  %s1371_s17 = sphi %s1449_s17, %s1805_s17   ;;  %s1367_s16 = sphi %s1447_s16, %s1804_s16   ;;  %s1363_s15 = sphi %s1445_s15, %s1803_s15  }
   0xb   : > { %s852_s19 = sadd.s32 4294967294, %s1375_s18   ;;  %p70_p0 = scmp.ne.s32.totalorder %s1367_s16, %s1363_s15 }
   0xc   : > { %p1776_p1 = scmp.eq.s32.totalorder %s1466_s0, 0  ;;  %p268_p3 = scmp.eq.s32.totalorder %s852_s19, 2 }
   0xd   : > { %p853_p5 = scmp.ge.s32.totalorder %s1375_s18, 1  ;;  %p275_p7 = scmp.lt.s32.totalorder %s1375_s18, 4 }
   0xe   : > { %p1475_p4 = por %p1776_p1, %p70_p0  ;;  %p1480_p6 = por %p268_p3, %p70_p0 }
   0xf   : > { %p1485_p8 = pnand %p853_p5, %p275_p7  ;;  %s1377_s23 = smov [#allocation6]  }
  0x10   : > { %s1784_s20 = scalar_select %p1475_p4, 1, 0 }
  0x11   : > { %s1785_s21 = scalar_select %p1480_p6, 1, 0 }
  0x12   : > { %s1787_s22 = scalar_select %p1485_p8, 1, 0 }
  0x13   : > { %1786 = sst [smem:[#allocation17_spill]] %s1785_s21  ;;  %s290_s24 = sshll.u32 %s1377_s23, 4  ;;  %s1489_s24 = int_to_ptr.vmem [resolvable:$true] %s290_s24 }
  0x14   : > { %p1119_p9 = pneg %p1485_p8  ;;  %s1378_s26 = smov [#allocation8]  }
  0x15   : > { %s312_s27 = sshll.u32 %s1378_s26, 4  ;;  %s1379_s28 = smov [#allocation9]   ;;  %s1499_s27 = int_to_ptr.vmem [resolvable:$true] %s312_s27 }
  0x16   : > { %p1495_p10 = pnand %p1119_p9, %p1776_p1  ;;  %s1501_s29 = sshll.u32 %s1379_s28, 4  ;;  %s329_s29 = int_to_ptr.vmem [resolvable:$true] %s1501_s29 }
  0x17   : > { %s1187_s12 = scalar_lea.hbm %s1767_s2, 2048 }
  0x18   : > { %p1188_p11 = scmp.ne.s32.totalorder %s1767_s2, %s1187_s12  ;;  %p1511_p12 = pneg %p1495_p10 }
  0x19   : > { %p1194_p3 = scmp.lt.u32.totalorder %s1187_s12, %s1767_s2 }
  0x1a   : > { %p1190_p13 = pnand %p1511_p12, %p1188_p11 }
  0x1c   : > { %p1191_p0 = pneg %p1190_p13 }
  0x1e   : > { %p1196_p5 = pnand %p1194_p3, %p1191_p0 }
  0x20   : > { %1199 = shalt.err (!%p1196_p5)
}
  0x21   : > { %s1200_s28 = scalar_lea.vmem %s1489_s24, 2048  ;;  %p1208_p2 = scmp.lt.s32.totalorder %s1489_s24, %s1489_s24 }
  0x22   : > { %p1201_p7 = scmp.ne.s32.totalorder %s1489_s24, %s1200_s28  ;;  %p1209_p6 = scmp.lt.s32.totalorder %s1200_s28, %s1200_s28 }
  0x24   : > { %p1203_p9 = pnand %p1201_p7, %p1511_p12  ;;  %p1210_p11 = por %p1209_p6, %p1208_p2 }
  0x26   : > { %p1204_p1 = pneg %p1203_p9 }
  0x28   : > { %p1211_p13 = pnand %p1210_p11, %p1204_p1 }
  0x2a   : > { %1214 = shalt.err (!%p1211_p13)
}
  0x2b   : > { %s1380_s30 = smov 128   ;;  %s1381_s11 = smov 8  }
  0x2c   : > { %1122 = dma.hbm_to_vmem [thread:$0]  (!%p1495_p10), %s1767_s2, 2048, %s1489_s24, [#allocation7], %s1380_s30, %s1380_s30, %s1381_s11  }
  0x2d   : > { %s1215_s26 = scalar_lea.hbm %s1771_s6, 2048 }
  0x2e   : > { %p1216_p1 = scmp.ne.s32.totalorder %s1771_s6, %s1215_s26  ;;  %p1222_p0 = scmp.lt.u32.totalorder %s1215_s26, %s1771_s6 }
  0x30   : > { %p1218_p2 = pnand %p1216_p1, %p1511_p12 }
  0x32   : > { %p1219_p6 = pneg %p1218_p2 }
  0x34   : > { %p1224_p3 = pnand %p1222_p0, %p1219_p6 }
  0x36   : > { %1227 = shalt.err (!%p1224_p3)
}
  0x37   : > { %s1228_s24 = scalar_lea.vmem %s1499_s27, 2048  ;;  %p1236_p11 = scmp.lt.s32.totalorder %s1499_s27, %s1499_s27 }
  0x38   : > { %p1229_p5 = scmp.ne.s32.totalorder %s1499_s27, %s1228_s24  ;;  %p1237_p13 = scmp.lt.s32.totalorder %s1228_s24, %s1228_s24 }
  0x3a   : > { %p1231_p7 = pnand %p1229_p5, %p1511_p12  ;;  %p1238_p1 = por %p1237_p13, %p1236_p11 }
  0x3c   : > { %p1232_p9 = pneg %p1231_p7 }
  0x3e   : > { %p1239_p2 = pnand %p1238_p1, %p1232_p9 }
  0x40   : > { %1242 = shalt.err (!%p1239_p2)
}
  0x41   : > { %1125 = dma.hbm_to_vmem [thread:$0]  (!%p1495_p10), %s1771_s6, 2048, %s1499_s27, [#allocation7], %s1380_s30, %s1380_s30, %s1381_s11  }
  0x42   : > { %s1243_s13 = scalar_lea.hbm %s1773_s8, 2048 }
  0x43   : > { %p1244_p6 = scmp.ne.s32.totalorder %s1773_s8, %s1243_s13  ;;  %p1250_p5 = scmp.lt.u32.totalorder %s1243_s13, %s1773_s8 }
  0x45   : > { %p1246_p0 = pnand %p1244_p6, %p1511_p12 }
  0x47   : > { %p1247_p3 = pneg %p1246_p0 }
  0x49   : > { %p1252_p7 = pnand %p1250_p5, %p1247_p3 }
  0x4b   : > { %1255 = shalt.err (!%p1252_p7)
}
  0x4c   : > { %s1256_s24 = scalar_lea.vmem %s329_s29, 2048  ;;  %p1264_p1 = scmp.lt.s32.totalorder %s329_s29, %s329_s29 }
  0x4d   : > { %p1257_p9 = scmp.ne.s32.totalorder %s329_s29, %s1256_s24  ;;  %p1265_p2 = scmp.lt.s32.totalorder %s1256_s24, %s1256_s24 }
  0x4f   : > { %p1259_p11 = pnand %p1257_p9, %p1511_p12  ;;  %p1266_p4 = por %p1265_p2, %p1264_p1 }
  0x51   : > { %p1260_p13 = pneg %p1259_p11 }
  0x53   : > { %p1267_p8 = pnand %p1266_p4, %p1260_p13 }
  0x55   : > { %1270 = shalt.err (!%p1267_p8)
}
  0x56   : > { %1128 = dma.hbm_to_vmem [thread:$0]  (!%p1495_p10), %s1773_s8, 2048, %s329_s29, [#allocation10], %s1380_s30, %s1380_s30, %s1381_s11  }
  0x57   : > { %s1584_s19 = sadd.s32 1, %s1375_s18   ;;  %s57_s15 = sadd.s32 1, %s1371_s17 }
  0x58   : > { %s54_s25 = ssub.s32 %s1375_s18, %s1584_s19  ;;  %p64_p8 = scmp.ne.s32.totalorder %s1371_s17, %s1367_s16 }
  0x59   : > { %p55_p4 = scmp.eq.s32.totalorder %s54_s25, 0  ;;  %p65_p12 = scmp.eq.s32.totalorder %s1375_s18, 0 }
  0x5a   : > { %p1140_p6 = scmp.lt.s32.totalorder %s1375_s18, 3  ;;  %p1790_p3 = scmp.eq.s32.totalorder %s1466_s0, 2 }
  0x5b   : > { %s1594_s21 = scalar_select %p55_p4, %s1371_s17, %s57_s15  }
  0x5c   : > { %p66_p0 = por %p65_p12, %p64_p8  ;;  %p1598_p5 = por %p1790_p3, %p64_p8 }
  0x5d   : > { %s345_s13 = sand.u32 1, %s1371_s17   ;;  %s859_s14 = sshll.u32 %s1375_s18, 7 }
  0x5e   : > { %s858_s29 = sshll.u32 %s345_s13, 3  ;;  %s1607_s23 = scalar_lea.hbm %s1766_s1, %s859_s14 }
  0x5f   : > { %s349_s26 = scalar_lea.vmem [#allocation3], %s858_s29  ;;  %p1609_p10 = pnand %p1140_p6, %p66_p0 }
  0x60   : > { %s356_s28 = sshll.u32 %s349_s26, 4  ;;  %s346_s27 = scalar_lea.sflag [#allocation4], %s345_s13  ;;  %s1613_s28 = int_to_ptr.vmem [resolvable:$true] %s356_s28 }
  0x61   : > { %s1271_s10 = scalar_lea.hbm %s1607_s23, 128  ;;  %p1273_p9 = pneg %p1609_p10 }
  0x62   : > { %p1272_p7 = scmp.ne.s32.totalorder %s1607_s23, %s1271_s10  ;;  %s1276_s14 = scalar_lea.hbm %s1766_s1, 384 }
  0x63   : > { %p1277_p1 = scmp.lt.u32.totalorder %s1607_s23, %s1766_s1  ;;  %p1278_p2 = scmp.lt.u32.totalorder %s1276_s14, %s1271_s10 }
  0x64   : > { %p1274_p11 = pnand %p1273_p9, %p1272_p7  ;;  %p1280_p8 = scmp.lt.u32.totalorder %s1271_s10, %s1607_s23 }
  0x65   : > { %p1279_p4 = por %p1278_p2, %p1277_p1 }
  0x66   : > { %p1275_p13 = pneg %p1274_p11 }
  0x67   : > { %p1281_p12 = por %p1280_p8, %p1279_p4 }
  0x69   : > { %p1282_p6 = pnand %p1281_p12, %p1275_p13 }
  0x6b   : > { %1285 = shalt.err (!%p1282_p6)
}
  0x6c   : > { %s1286_s13 = scalar_lea.vmem %s1613_s28, 128  ;;  %s1382_s11 = smov [#allocation3]  }
  0x6d   : > { %p1287_p0 = scmp.ne.s32.totalorder %s1613_s28, %s1286_s13  ;;  %s1291_s26 = sshll.u32 %s1382_s11, 4  ;;  %s1292_s26 = int_to_ptr.vmem [resolvable:$false] %s1291_s26 }
  0x6e   : > { %s1293_s25 = scalar_lea.vmem %s1292_s26, 256  ;;  %p1294_p11 = scmp.lt.s32.totalorder %s1613_s28, %s1292_s26 }
  0x6f   : > { %p1289_p3 = pnand %p1287_p0, %p1273_p9  ;;  %p1295_p1 = scmp.lt.s32.totalorder %s1293_s25, %s1286_s13 }
  0x71   : > { %p1290_p7 = pneg %p1289_p3  ;;  %p1296_p2 = por %p1295_p1, %p1294_p11 }
  0x73   : > { %p1297_p4 = pnand %p1296_p2, %p1290_p7 }
  0x75   : > { %1300 = shalt.err (!%p1297_p4)
}
  0x76   : > { %1132 = dma.hbm_to_vmem [thread:$0]  (!%p1609_p10), %s1607_s23, 128, %s1613_s28, %s346_s27  }
  0x77   : > { %p1793_p13 = scmp.ne.s32.totalorder %s1787_s22, 0 }
  0x78   : > { %s1643_s10 = sand.u32 (!%p1793_p13), 1, %s1367_s16   ;;  %p1794_p9 = scmp.ne.s32.totalorder (!%p1793_p13), %s1784_s20, 0 }
  0x79   : > { %365 = sbr.rel (%p1793_p13) target bundleno = 1004 (0x3ec), region = 60  ;;  %s861_s15 = sshll.u32 (!%p1793_p13), %s1643_s10, 3 }
  0x7a   : > { %s368_s14 = scalar_lea.sflag (!%p1793_p13), [#allocation4], %s1643_s10  ;;  %s1649_s29 = scalar_lea.vmem (!%p1793_p13), [#allocation3], %s861_s15 }
  0x80   : > { %1346 = dma.done.wait (%p1794_p9), %s368_s14, 128  }
  0x81   : > { %1348 = vsyncadd (%p1794_p9), %s368_s14, 4294967168  ;;  %p1795_p10 = scmp.eq.s32.totalorder %s1466_s0, 0 }
  0x83   : > { %1350 = dma.done.wait (%p1795_p10), [#allocation7], 4096   ;;  %p1796_p8 = pmov %p1795_p10 }
  0x85   : > { %1352 = vsyncadd (%p1796_p8), [#allocation7], 4294963200  ;;  %p1797_p12 = pmov %p1796_p8 }
  0x86   : > { %p1798_p6 = pmov %p1796_p8 }
  0x87   : > { %1354 = dma.done.wait (%p1797_p12), [#allocation10], 2048  }
  0x88   : > { %1356 = vsyncadd (%p1798_p6), [#allocation10], 4294965248  ;;  %v1383_v0 = vmov 0.0|0.0   ;;  %vm1384_vm0 = vmmov 0   ;;  %v1385_v1 = vmov 0.0   ;;  %v421_v2 = vld [vmem:[#allocation6] sm:$0xff] }
  0x89   : > { %1031 = vmatprep.subr.bf16.mxu0 %v1383_v0  ;;  %958 = vmatprep.mubr.msk.f32.mxu0 %vm1384_vm0, %v1385_v1  ;;  %v422_v3 = vld [vmem:[#allocation6 + $0x8] sm:$0xff]  ;;  %v423_v4 = vld [vmem:[#allocation6 + $0x10] sm:$0xff]  ;;  %v424_v6 = vld [vmem:[#allocation6 + $0x18] sm:$0xff]  ;;  %s731_s11 = sld [smem:[#allocation2]]  ;;  %s419_s20 = scalar_lea.vmem [#allocation11], %s861_s15 }
  0x8a   : > { %1055 = vmatprep.subr.bf16.mxu1 %v1383_v0  ;;  %993 = vmatprep.mubr.msk.f32.mxu1 %vm1384_vm0, %v1385_v1  ;;  %v1032_v5 = vpack.c.bf16 %v422_v3, %v421_v2  ;;  %v1035_v7 = vpack.c.bf16 %v424_v6, %v423_v4  ;;  %v425_v8 = vld [vmem:[#allocation6 + $0x20] sm:$0xff]  ;;  %v426_v9 = vld [vmem:[#allocation6 + $0x28] sm:$0xff]  ;;  %v427_v11 = vld [vmem:[#allocation6 + $0x30] sm:$0xff]  ;;  %s753_s22 = sshll.u32 %s419_s20, 4  ;;  %s1799_s24 = sld [smem:[#allocation18_spill]]  ;;  %s1724_s22 = int_to_ptr.vmem [resolvable:$true] %s753_s22 }
  0x8b   : > { %v1038_v10 = vpack.c.bf16 %v426_v9, %v425_v8  ;;  %v428_v12 = vld [vmem:[#allocation6 + $0x38] sm:$0xff]  ;;  %v429_v14 = vld [vmem:[#allocation6 + $0x40] sm:$0xff]  ;;  %v430_v15 = vld [vmem:[#allocation6 + $0x48] sm:$0xff]  ;;  %s740_s30 = scalar_lea.sflag [#allocation5], %s1643_s10  ;;  %s1301_s13 = scalar_lea.vmem %s1724_s22, 128 }
  0x8c   : > { %1033 = vmatpush3.bf16.msra.mxu0 %v1032_v5  ;;  %v1041_v13 = vpack.c.bf16 %v428_v12, %v427_v11  ;;  %v1044_v16 = vpack.c.bf16 %v430_v15, %v429_v14  ;;  %v431_v17 = vld [vmem:[#allocation6 + $0x50] sm:$0xff]  ;;  %v432_v18 = vld [vmem:[#allocation6 + $0x58] sm:$0xff]  ;;  %v433_v20 = vld [vmem:[#allocation6 + $0x60] sm:$0xff]  ;;  %p1302_p0 = scmp.ne.s32.totalorder %s1724_s22, %s1301_s13 }
  0x8d   : > { %1034 = vmatprep.subr.bf16.mxu0 %v1383_v0  ;;  %v1047_v19 = vpack.c.bf16 %v432_v18, %v431_v17  ;;  %v434_v21 = vld [vmem:[#allocation6 + $0x68] sm:$0xff]  ;;  %v435_v23 = vld [vmem:[#allocation6 + $0x70] sm:$0xff]  ;;  %v436_v24 = vld [vmem:[#allocation6 + $0x78] sm:$0xff] }
  0x8e   : > { %v1050_v22 = vpack.c.bf16 %v434_v21, %v433_v20  ;;  %v1053_v25 = vpack.c.bf16 %v436_v24, %v435_v23  ;;  %v1675_v26 = vld [vmem:[%s1649_s29] sm:$0xff]  ;;  %v544_v27 = vld [vmem:[#allocation8] sm:$0xff]  ;;  %v545_v28 = vld [vmem:[#allocation8 + $0x8] sm:$0xff]  ;;  %s872_s29 = sshll.u32 %s1466_s0, 7  ;;  %p1303_p3 = pnand %p1302_p0, %p1598_p5 }
  0x8f   : > { %v1056_v29 = vpack.c.bf16 %v545_v28, %v544_v27  ;;  %v866_v30 = vld [vmem:[%s1768_s3] ss:$0 sm:$0xff]  ;;  %v547_v36 = vld [vmem:[#allocation8 + $0x18] sm:$0xff]  ;;  %v548_v38 = vld [vmem:[#allocation8 + $0x20] sm:$0xff]  ;;  %s734_s26 = ssub.f32 1.0, %s731_s11  ;;  %s1386_s0 = smov [#allocation11]  }
  0x90   : > { %1036 = vmatpush3.bf16.msra.mxu0 %v1035_v7  ;;  %v546_v35 = vld [vmem:[#allocation8 + $0x10] sm:$0xff]  ;;  %v549_v39 = vld [vmem:[#allocation8 + $0x28] sm:$0xff]  ;;  %v551_v42 = vld [vmem:[#allocation8 + $0x38] sm:$0xff]  ;;  %s1722_s27 = scalar_lea.hbm %s1799_s24, %s872_s29  ;;  %p1304_p7 = pneg %p1303_p3 }
  0x91   : > { %1037 = vmatprep.subr.bf16.mxu0 %v1383_v0  ;;  %1057 = vmatpush3.bf16.msra.mxu1 %v1056_v29  ;;  %v1059_v37 = vpack.c.bf16 %v547_v36, %v546_v35  ;;  %v1062_v40 = vpack.c.bf16 %v549_v39, %v548_v38  ;;  %v550_v41 = vld [vmem:[#allocation8 + $0x30] sm:$0xff]  ;;  %v552_v44 = vld [vmem:[#allocation8 + $0x40] sm:$0xff]  ;;  %v553_v45 = vld [vmem:[#allocation8 + $0x48] sm:$0xff]  ;;  %s1305_s15 = sshll.u32 %s1386_s0, 4  ;;  %s1306_s15 = int_to_ptr.vmem [resolvable:$false] %s1305_s15 }
  0x92   : > { %1058 = vmatprep.subr.bf16.mxu1 %v1383_v0  ;;  %v1065_v43 = vpack.c.bf16 %v551_v42, %v550_v41  ;;  %v1068_v46 = vpack.c.bf16 %v553_v45, %v552_v44  ;;  %v554_v47 = vld [vmem:[#allocation8 + $0x50] sm:$0xff]  ;;  %v555_v48 = vld [vmem:[#allocation8 + $0x58] sm:$0xff]  ;;  %v556_v50 = vld [vmem:[#allocation8 + $0x60] sm:$0xff]  ;;  %p1308_p11 = scmp.lt.s32.totalorder %s1724_s22, %s1306_s15 }
  0x93   : > { %v1071_v49 = vpack.c.bf16 %v555_v48, %v554_v47  ;;  %v557_v51 = vld [vmem:[#allocation8 + $0x68] sm:$0xff]  ;;  %v558_v53 = vld [vmem:[#allocation8 + $0x70] sm:$0xff]  ;;  %v559_v54 = vld [vmem:[#allocation8 + $0x78] sm:$0xff] }
  0x94   : > { %1039 = vmatpush3.bf16.msra.mxu0 %v1038_v10  ;;  %v1074_v52 = vpack.c.bf16 %v557_v51, %v556_v50  ;;  %v1077_v55 = vpack.c.bf16 %v559_v54, %v558_v53  ;;  %v638_v56 = vld [vmem:[#allocation9] sm:$0xff]  ;;  %v639_v57 = vld [vmem:[#allocation9 + $0x8] sm:$0xff]  ;;  %v640_v58 = vld [vmem:[#allocation9 + $0x10] sm:$0xff] }
  0x95   : > { %1040 = vmatprep.subr.bf16.mxu0 %v1383_v0  ;;  %1060 = vmatpush3.bf16.msra.mxu1 %v1059_v37  ;;  %v1080_v59 = vpack.c.bf16 %v639_v57, %v638_v56  ;;  %v641_v60 = vld [vmem:[#allocation9 + $0x18] sm:$0xff]  ;;  %v642_v62 = vld [vmem:[#allocation9 + $0x20] sm:$0xff]  ;;  %v643_v63 = vld [vmem:[#allocation9 + $0x28] sm:$0xff]  ;;  %v735_v37 = vstv %s734_s26 }
  0x96   : > { %1061 = vmatprep.subr.bf16.mxu1 %v1383_v0  ;;  %v1083_v61 = vpack.c.bf16 %v641_v60, %v640_v58  ;;  %v644_v2 = vld [vmem:[#allocation9 + $0x30] sm:$0xff]  ;;  %v645_v3 = vld [vmem:[#allocation9 + $0x38] sm:$0xff]  ;;  %v646_v5 = vld [vmem:[#allocation9 + $0x40] sm:$0xff]  ;;  %v736_v41 = vmul.f32 %v735_v37, %v1675_v26 }
  0x97   : > { %v1089_v4 = vpack.c.bf16 %v645_v3, %v644_v2  ;;  %v647_v6 = vld [vmem:[#allocation9 + $0x48] sm:$0xff]  ;;  %v648_v8 = vld [vmem:[#allocation9 + $0x50] sm:$0xff]  ;;  %v649_v9 = vld [vmem:[#allocation9 + $0x58] sm:$0xff] }
  0x98   : > { %1042 = vmatpush3.bf16.msra.mxu0 %v1041_v13  ;;  %v1092_v7 = vpack.c.bf16 %v647_v6, %v646_v5  ;;  %v1095_v10 = vpack.c.bf16 %v649_v9, %v648_v8  ;;  %v650_v11 = vld [vmem:[#allocation9 + $0x60] sm:$0xff]  ;;  %v651_v12 = vld [vmem:[#allocation9 + $0x68] sm:$0xff]  ;;  %v867_v24 = vld [vmem:[%s1769_s4] ss:$0 sm:$0xff] }
  0x99   : > { %1043 = vmatprep.subr.bf16.mxu0 %v1383_v0  ;;  %1063 = vmatpush3.bf16.msra.mxu1 %v1062_v40  ;;  %v1098_v13 = vpack.c.bf16 %v651_v12, %v650_v11  ;;  %v652_v29 = vld [vmem:[#allocation9 + $0x70] sm:$0xff]  ;;  %v732_v40 = vstv %s731_s11  ;;  %s1307_s11 = scalar_lea.vmem %s1306_s15, 256 }
  0x9a   : > { %1064 = vmatprep.subr.bf16.mxu1 %v1383_v0  ;;  %v870_v38 = vld [vmem:[%s1774_s9] ss:$0 sm:$0xff]  ;;  %p1309_p1 = scmp.lt.s32.totalorder %s1307_s11, %s1301_s13 }
  0x9c   : > { %1045 = vmatpush3.bf16.msra.mxu0 %v1044_v16  ;;  %p1310_p2 = por %p1309_p1, %p1308_p11 }
  0x9d   : > { %1046 = vmatprep.subr.bf16.mxu0 %v1383_v0  ;;  %1066 = vmatpush3.bf16.msra.mxu1 %v1065_v43 }
  0x9e   : > { %1067 = vmatprep.subr.bf16.mxu1 %v1383_v0  ;;  %p1311_p4 = pnand %p1310_p2, %p1304_p7 }
  0xa0   : > { %1048 = vmatpush3.bf16.msra.mxu0 %v1047_v19 }
  0xa1   : > { %1049 = vmatprep.subr.bf16.mxu0 %v1383_v0  ;;  %1069 = vmatpush3.bf16.msra.mxu1 %v1068_v46 }
  0xa2   : > { %1070 = vmatprep.subr.bf16.mxu1 %v1383_v0 }
  0xa4   : > { %1051 = vmatpush3.bf16.msra.mxu0 %v1050_v22 }
  0xa5   : > { %1052 = vmatprep.subr.bf16.mxu0 %v1383_v0  ;;  %1072 = vmatpush3.bf16.msra.mxu1 %v1071_v49 }
  0xa6   : > { %1073 = vmatprep.subr.bf16.mxu1 %v1383_v0 }
  0xa8   : > { %1054 = vmatpush3.bf16.msra.mxu0 %v1053_v25 }
  0xa9   : > { %1079 = vmatprep.subr.bf16.mxu0 %v1383_v0  ;;  %1075 = vmatpush3.bf16.msra.mxu1 %v1074_v52 }
  0xaa   : > { %1076 = vmatprep.subr.bf16.mxu1 %v1383_v0 }
  0xab   : > { %959 = vmatmul.mubr.f32.vlgmr.msra.gmra.mrb[0].mxu0 %v1675_v26 }
  0xac   : > { %1028 = vmatprep.mubr.msk.f32.mxu0 %vm1384_vm0, %v1385_v1  ;;  %1081 = vmatpush3.bf16.msra.mxu0 %v1080_v59  ;;  %v1086_v1 = vpack.c.bf16 %v643_v63, %v642_v62 }
  0xad   : > { %1078 = vmatpush3.bf16.msra.mxu1 %v1077_v55  ;;  %1082 = vmatprep.subr.bf16.mxu0 %v1383_v0 }
  0xb0   : > { %1084 = vmatpush3.bf16.msra.mxu0 %v1083_v61 }
  0xb1   : > { %1085 = vmatprep.subr.bf16.mxu0 %v1383_v0 }
  0xb4   : > { %1087 = vmatpush3.bf16.msra.mxu0 %v1086_v1 }
  0xb5   : > { %1088 = vmatprep.subr.bf16.mxu0 %v1383_v0 }
  0xb8   : > { %1090 = vmatpush3.bf16.msra.mxu0 %v1089_v4 }
  0xb9   : > { %1091 = vmatprep.subr.bf16.mxu0 %v1383_v0 }
  0xbc   : > { %1093 = vmatpush3.bf16.msra.mxu0 %v1092_v7 }
  0xbd   : > { %1094 = vmatprep.subr.bf16.mxu0 %v1383_v0 }
  0xc0   : > { %1096 = vmatpush3.bf16.msra.mxu0 %v1095_v10 }
  0xc1   : > { %1097 = vmatprep.subr.bf16.mxu0 %v1383_v0 }
  0xc4   : > { %1099 = vmatpush3.bf16.msra.mxu0 %v1098_v13 }
  0xc5   : > { %1100 = vmatprep.subr.bf16.mxu0 %v1383_v0  ;;  %v868_v0 = vld [vmem:[%s1770_s5] ss:$0 sm:$0xff] }
 0x17e   : > { %v510_v31 = vpop.f32.mrb[0].mxu0 }
 0x17f   : > { %v1684_v32 = vadd.f32 %v866_v30, %v510_v31  ;;  %v960_v33 = vpop.f32.mrb[1].mxu0  ;;  %v653_v30 = vld [vmem:[#allocation9 + $0x78] sm:$0xff] }
 0x180   : > { %v1101_v31 = vpack.c.bf16 %v653_v30, %v652_v29 }
 0x181   : > { %514 = vadd.xlane.f32.xlu0 %v1684_v32  ;;  %v516_v34 = vmul.f32 %v1684_v32, %v1684_v32 }
 0x182   : > { %1102 = vmatpush3.bf16.msra.mxu0 %v1101_v31 }
 0x185   : > { %517 = vadd.xlane.f32.xlu0 %v516_v34 }
 0x20e   : > { %v515_v14 = vpop.xlane.xlu0 %514 }
 0x20f   : > { %v519_v15 = vmul.f32 0.03125, %v515_v14 }
 0x211   : > { %v521_v17 = vmul.f32 %v519_v15, %v519_v15  ;;  %v524_v22 = vsub.f32 %v1684_v32, %v519_v15  ;;  %v869_v32 = vld [vmem:[%s1772_s7] ss:$0 sm:$0xff] }
 0x212   : > { %v518_v16 = vpop.xlane.xlu0 %517 }
 0x213   : > { %v520_v18 = vmul.f32 0.03125, %v518_v16 }
 0x215   : > { %v522_v19 = vsub.f32 %v520_v18, %v521_v17 }
 0x217   : > { %v523_v20 = vmax.f32 %v522_v19, 0.0 }
 0x219   : > { %v525_v21 = vadd.f32 1e-05, %v523_v20 }
 0x21b   : > { %1185 = vrsqrt.f32 %v525_v21 }
 0x225   : > { %v1186_v23 = vpop.eup %1185 }
 0x226   : > { %v527_v25 = vmul.f32 %v1186_v23, %v524_v22 }
 0x228   : > { %v535_v27 = vmul.f32 %v867_v24, %v527_v25 }
 0x22a   : > { %v543_v28 = vadd.f32 %v868_v0, %v535_v27 }
 0x22c   : > { %994 = vmatmul.mubr.f32.vlgmr.msra.gmra.mrb[0].mxu1 %v543_v28 }
 0x2ff   : > { %v633_v33 = vpop.f32.mrb[0].mxu1 }
 0x300   : > { %v634_v34 = vadd.f32 %v869_v32, %v633_v33  ;;  %v995_v35 = vpop.f32.mrb[1].mxu1 }
 0x302   : > { %v637_v36 = vmax.f32 %v634_v34, 0.0 }
 0x304   : > { %1029 = vmatmul.mubr.f32.vlgmr.msra.gmra.mrb[2].mxu0 %v637_v36 }
 0x3d7   : > { %v727_v39 = vpop.f32.mrb[2].mxu0 }
 0x3d8   : > { %v728_v42 = vadd.f32 %v870_v38, %v727_v39  ;;  %v1030_v43 = vpop.f32.mrb[3].mxu0 }
 0x3da   : > { %v733_v44 = vmul.f32 %v732_v40, %v728_v42 }
 0x3dc   : > { %v737_v45 = vadd.f32 %v736_v41, %v733_v44 }
 0x3de   : > { %738 = vst [vmem:[%s419_s20] sm:$0xff] %v737_v45 }
 0x3df   : > { %1314 = shalt.err (!%p1311_p4)
}
 0x3e0   : > { %s1315_s10 = scalar_lea.hbm %s1722_s27, 128  ;;  %s1319_s14 = scalar_lea.hbm %s1799_s24, 384 }
 0x3e1   : > { %p1316_p13 = scmp.ne.s32.totalorder %s1722_s27, %s1315_s10  ;;  %p1320_p8 = scmp.lt.u32.totalorder %s1722_s27, %s1799_s24 }
 0x3e2   : > { %p1321_p12 = scmp.lt.u32.totalorder %s1319_s14, %s1315_s10  ;;  %p1323_p0 = scmp.lt.u32.totalorder %s1315_s10, %s1722_s27 }
 0x3e3   : > { %p1317_p9 = pnand %p1316_p13, %p1598_p5 }
 0x3e4   : > { %p1322_p6 = por %p1321_p12, %p1320_p8 }
 0x3e5   : > { %p1318_p10 = pneg %p1317_p9 }
 0x3e6   : > { %p1324_p3 = por %p1323_p0, %p1322_p6 }
 0x3e8   : > { %p1325_p7 = pnand %p1324_p3, %p1318_p10 }
 0x3ea   : > { %1328 = shalt.err (!%p1325_p7)
}
 0x3eb   : > { %1117 = dma.vmem_to_hbm [thread:$0]  (%p1598_p5), %s1724_s22, 128, %s1722_s27, %s740_s30  }
 0x3ec PF: > { %s1800_s23 = sld [smem:[#allocation16_spill]]  ;;  %s1801_s28 = sld [smem:[#allocation17_spill]] }
 0x3ed   : > { %p1144_p11 = scmp.ge.s32.totalorder %s1375_s18, 2 }
 0x3f2   : > { %s765_s13 = sand.u32 1, %s1800_s23   ;;  %p1802_p1 = scmp.ne.s32.totalorder %s1801_s28, 0 }
 0x3f3   : > { %s766_s0 = scalar_lea.sflag [#allocation5], %s765_s13 }
 0x3f4   : > { %p1134_p2 = pnand %p1144_p11, %p1802_p1 }
 0x3f6   : > { %1358 = dma.done.wait (!%p1134_p2), %s766_s0, 128  }
 0x3f7   : > { %1360 = vsyncadd (!%p1134_p2), %s766_s0, 4294967168  ;;  %p26_p4 = scmp.ge.s32.totalorder %s1584_s19, 5   ;;  %s1803_s15 = smov %s1367_s16 }
 0x3f8   : > { %s1804_s16 = smov %s1371_s17  ;;  %s1805_s17 = smov %s1594_s21 }
 0x3f9   : > { %s1806_s18 = smov %s1584_s19  ;;  %28 = sbr.rel (!%p26_p4) target bundleno = 10 (0xa), region = 117 }
 0x400   :  { %771 = vsyncpa [#allocation4], 1 }
 0x401   :  { %773 = vsyncpa [#allocation4 + $0x1], 1 }
 0x402   :  { %774 = vsyncpa [#allocation7], 1 }
 0x403   :  { %775 = vsyncpa [#allocation10], 1 }
 0x404   :  { %776 = vsyncpa [#allocation5], 1 }
 0x405   :  { %778 = vsyncpa [#allocation5 + $0x1], 1 }

// kernel: tpu_custom_call.1
= control target key start
LH: loop header
LB: loop body
LE: loop exit
PB: predicated region body
PF: predicated region fallthrough
CT: control target
= control target key end

     0   :  { %s1765_s0 = inlined_call_operand.<no memory space> [shape: f32[1,1], index: 0, kind: input, shape index: {}]   ;;  %s1766_s1 = inlined_call_operand.hbm [shape: f32[24,128], index: 1, kind: input, shape index: {}]   ;;  %s1767_s2 = inlined_call_operand.hbm [shape: f32[128,128], index: 2, kind: input, shape index: {}]   ;;  %s1768_s3 = inlined_call_operand.vmem [shape: f32[1,128], index: 3, kind: input, shape index: {}]   ;;  %s1769_s4 = inlined_call_operand.vmem [shape: f32[1,128], index: 4, kind: input, shape index: {}]   ;;  %s1770_s5 = inlined_call_operand.vmem [shape: f32[1,128], index: 5, kind: input, shape index: {}]   ;;  %s1771_s6 = inlined_call_operand.hbm [shape: f32[128,128], index: 6, kind: input, shape index: {}]   ;;  %s1772_s7 = inlined_call_operand.vmem [shape: f32[1,128], index: 7, kind: input, shape index: {}]   ;;  %s1773_s8 = inlined_call_operand.hbm [shape: f32[128,128], index: 8, kind: input, shape index: {}]   ;;  %s1774_s9 = inlined_call_operand.vmem [shape: f32[1,128], index: 9, kind: input, shape index: {}]   ;;  %s1775_s10 = inlined_call_operand.hbm [shape: f32[24,128], index: 10, kind: output, shape index: {}]  }
   0x1   :  { %1782 = sst [smem:[#allocation18_spill]] %s1775_s10 }
   0x2   :  { %15 = sst [smem:[#allocation2]] %s1765_s0 }
   0x3   :  { %16 = vsyncpa [#allocation4], 0 }
   0x4   :  { %18 = vsyncpa [#allocation4 + $0x1], 0 }
   0x5   :  { %19 = vsyncpa [#allocation7], 0 }
   0x6   :  { %20 = vsyncpa [#allocation10], 0 }
   0x7   :  { %21 = vsyncpa [#allocation5], 0 }
   0x8   :  { %23 = vsyncpa [#allocation5 + $0x1], 0  ;;  %s1445_s15 = smov 0   ;;  %s1447_s16 = smov 0  }
   0x9   :  { %s1449_s17 = smov 0   ;;  %s1451_s18 = smov 0  }
   0xa LB: > { %1783 = sst [smem:[#allocation16_spill]] %s1363_s15  ;;  %s1466_s0 = sadd.s32 4294967295, %s1375_s18   ;;  %s1375_s18 = sphi %s1451_s18, %s1806_s18   ;;  %s1371_s17 = sphi %s1449_s17, %s1805_s17   ;;  %s1367_s16 = sphi %s1447_s16, %s1804_s16   ;;  %s1363_s15 = sphi %s1445_s15, %s1803_s15  }
   0xb   : > { %s852_s19 = sadd.s32 4294967294, %s1375_s18   ;;  %p70_p0 = scmp.ne.s32.totalorder %s1367_s16, %s1363_s15 }
   0xc   : > { %p1776_p1 = scmp.eq.s32.totalorder %s1466_s0, 0  ;;  %p268_p3 = scmp.eq.s32.totalorder %s852_s19, 2 }
   0xd   : > { %p853_p5 = scmp.ge.s32.totalorder %s1375_s18, 1  ;;  %p275_p7 = scmp.lt.s32.totalorder %s1375_s18, 4 }
   0xe   : > { %p1475_p4 = por %p1776_p1, %p70_p0  ;;  %p1480_p6 = por %p268_p3, %p70_p0 }
   0xf   : > { %p1485_p8 = pnand %p853_p5, %p275_p7  ;;  %s1377_s23 = smov [#allocation6]  }
  0x10   : > { %s1784_s20 = scalar_select %p1475_p4, 1, 0 }
  0x11   : > { %s1785_s21 = scalar_select %p1480_p6, 1, 0 }
  0x12   : > { %s1787_s22 = scalar_select %p1485_p8, 1, 0 }
  0x13   : > { %1786 = sst [smem:[#allocation17_spill]] %s1785_s21  ;;  %s290_s24 = sshll.u32 %s1377_s23, 4  ;;  %s1489_s24 = int_to_ptr.vmem [resolvable:$true] %s290_s24 }
  0x14   : > { %p1119_p9 = pneg %p1485_p8  ;;  %s1378_s26 = smov [#allocation8]  }
  0x15   : > { %s312_s27 = sshll.u32 %s1378_s26, 4  ;;  %s1379_s28 = smov [#allocation9]   ;;  %s1499_s27 = int_to_ptr.vmem [resolvable:$true] %s312_s27 }
  0x16   : > { %p1495_p10 = pnand %p1119_p9, %p1776_p1  ;;  %s1501_s29 = sshll.u32 %s1379_s28, 4  ;;  %s329_s29 = int_to_ptr.vmem [resolvable:$true] %s1501_s29 }
  0x17   : > { %s1187_s12 = scalar_lea.hbm %s1767_s2, 2048 }
  0x18   : > { %p1188_p11 = scmp.ne.s32.totalorder %s1767_s2, %s1187_s12  ;;  %p1511_p12 = pneg %p1495_p10 }
  0x19   : > { %p1194_p3 = scmp.lt.u32.totalorder %s1187_s12, %s1767_s2 }
  0x1a   : > { %p1190_p13 = pnand %p1511_p12, %p1188_p11 }
  0x1c   : > { %p1191_p0 = pneg %p1190_p13 }
  0x1e   : > { %p1196_p5 = pnand %p1194_p3, %p1191_p0 }
  0x20   : > { %1199 = shalt.err (!%p1196_p5)
}
  0x21   : > { %s1200_s28 = scalar_lea.vmem %s1489_s24, 2048  ;;  %p1208_p2 = scmp.lt.s32.totalorder %s1489_s24, %s1489_s24 }
  0x22   : > { %p1201_p7 = scmp.ne.s32.totalorder %s1489_s24, %s1200_s28  ;;  %p1209_p6 = scmp.lt.s32.totalorder %s1200_s28, %s1200_s28 }
  0x24   : > { %p1203_p9 = pnand %p1201_p7, %p1511_p12  ;;  %p1210_p11 = por %p1209_p6, %p1208_p2 }
  0x26   : > { %p1204_p1 = pneg %p1203_p9 }
  0x28   : > { %p1211_p13 = pnand %p1210_p11, %p1204_p1 }
  0x2a   : > { %1214 = shalt.err (!%p1211_p13)
}
  0x2b   : > { %s1380_s30 = smov 128   ;;  %s1381_s11 = smov 8  }
  0x2c   : > { %1122 = dma.hbm_to_vmem [thread:$0]  (!%p1495_p10), %s1767_s2, 2048, %s1489_s24, [#allocation7], %s1380_s30, %s1380_s30, %s1381_s11  }
  0x2d   : > { %s1215_s26 = scalar_lea.hbm %s1771_s6, 2048 }
  0x2e   : > { %p1216_p1 = scmp.ne.s32.totalorder %s1771_s6, %s1215_s26  ;;  %p1222_p0 = scmp.lt.u32.totalorder %s1215_s26, %s1771_s6 }
  0x30   : > { %p1218_p2 = pnand %p1216_p1, %p1511_p12 }
  0x32   : > { %p1219_p6 = pneg %p1218_p2 }
  0x34   : > { %p1224_p3 = pnand %p1222_p0, %p1219_p6 }
  0x36   : > { %1227 = shalt.err (!%p1224_p3)
}
  0x37   : > { %s1228_s24 = scalar_lea.vmem %s1499_s27, 2048  ;;  %p1236_p11 = scmp.lt.s32.totalorder %s1499_s27, %s1499_s27 }
  0x38   : > { %p1229_p5 = scmp.ne.s32.totalorder %s1499_s27, %s1228_s24  ;;  %p1237_p13 = scmp.lt.s32.totalorder %s1228_s24, %s1228_s24 }
  0x3a   : > { %p1231_p7 = pnand %p1229_p5, %p1511_p12  ;;  %p1238_p1 = por %p1237_p13, %p1236_p11 }
  0x3c   : > { %p1232_p9 = pneg %p1231_p7 }
  0x3e   : > { %p1239_p2 = pnand %p1238_p1, %p1232_p9 }
  0x40   : > { %1242 = shalt.err (!%p1239_p2)
}
  0x41   : > { %1125 = dma.hbm_to_vmem [thread:$0]  (!%p1495_p10), %s1771_s6, 2048, %s1499_s27, [#allocation7], %s1380_s30, %s1380_s30, %s1381_s11  }
  0x42   : > { %s1243_s13 = scalar_lea.hbm %s1773_s8, 2048 }
  0x43   : > { %p1244_p6 = scmp.ne.s32.totalorder %s1773_s8, %s1243_s13  ;;  %p1250_p5 = scmp.lt.u32.totalorder %s1243_s13, %s1773_s8 }
  0x45   : > { %p1246_p0 = pnand %p1244_p6, %p1511_p12 }
  0x47   : > { %p1247_p3 = pneg %p1246_p0 }
  0x49   : > { %p1252_p7 = pnand %p1250_p5, %p1247_p3 }
  0x4b   : > { %1255 = shalt.err (!%p1252_p7)
}
  0x4c   : > { %s1256_s24 = scalar_lea.vmem %s329_s29, 2048  ;;  %p1264_p1 = scmp.lt.s32.totalorder %s329_s29, %s329_s29 }
  0x4d   : > { %p1257_p9 = scmp.ne.s32.totalorder %s329_s29, %s1256_s24  ;;  %p1265_p2 = scmp.lt.s32.totalorder %s1256_s24, %s1256_s24 }
  0x4f   : > { %p1259_p11 = pnand %p1257_p9, %p1511_p12  ;;  %p1266_p4 = por %p1265_p2, %p1264_p1 }
  0x51   : > { %p1260_p13 = pneg %p1259_p11 }
  0x53   : > { %p1267_p8 = pnand %p1266_p4, %p1260_p13 }
  0x55   : > { %1270 = shalt.err (!%p1267_p8)
}
  0x56   : > { %1128 = dma.hbm_to_vmem [thread:$0]  (!%p1495_p10), %s1773_s8, 2048, %s329_s29, [#allocation10], %s1380_s30, %s1380_s30, %s1381_s11  }
  0x57   : > { %s1584_s19 = sadd.s32 1, %s1375_s18   ;;  %s57_s15 = sadd.s32 1, %s1371_s17 }
  0x58   : > { %s54_s25 = ssub.s32 %s1375_s18, %s1584_s19  ;;  %p64_p8 = scmp.ne.s32.totalorder %s1371_s17, %s1367_s16 }
  0x59   : > { %p55_p4 = scmp.eq.s32.totalorder %s54_s25, 0  ;;  %p65_p12 = scmp.eq.s32.totalorder %s1375_s18, 0 }
  0x5a   : > { %p1140_p6 = scmp.lt.s32.totalorder %s1375_s18, 3  ;;  %p1790_p3 = scmp.eq.s32.totalorder %s1466_s0, 2 }
  0x5b   : > { %s1594_s21 = scalar_select %p55_p4, %s1371_s17, %s57_s15  }
  0x5c   : > { %p66_p0 = por %p65_p12, %p64_p8  ;;  %p1598_p5 = por %p1790_p3, %p64_p8 }
  0x5d   : > { %s345_s13 = sand.u32 1, %s1371_s17   ;;  %s859_s14 = sshll.u32 %s1375_s18, 7 }
  0x5e   : > { %s858_s29 = sshll.u32 %s345_s13, 3  ;;  %s1607_s23 = scalar_lea.hbm %s1766_s1, %s859_s14 }
  0x5f   : > { %s349_s26 = scalar_lea.vmem [#allocation3], %s858_s29  ;;  %p1609_p10 = pnand %p1140_p6, %p66_p0 }
  0x60   : > { %s356_s28 = sshll.u32 %s349_s26, 4  ;;  %s346_s27 = scalar_lea.sflag [#allocation4], %s345_s13  ;;  %s1613_s28 = int_to_ptr.vmem [resolvable:$true] %s356_s28 }
  0x61   : > { %s1271_s10 = scalar_lea.hbm %s1607_s23, 128  ;;  %p1273_p9 = pneg %p1609_p10 }
  0x62   : > { %p1272_p7 = scmp.ne.s32.totalorder %s1607_s23, %s1271_s10  ;;  %s1276_s14 = scalar_lea.hbm %s1766_s1, 384 }
  0x63   : > { %p1277_p1 = scmp.lt.u32.totalorder %s1607_s23, %s1766_s1  ;;  %p1278_p2 = scmp.lt.u32.totalorder %s1276_s14, %s1271_s10 }
  0x64   : > { %p1274_p11 = pnand %p1273_p9, %p1272_p7  ;;  %p1280_p8 = scmp.lt.u32.totalorder %s1271_s10, %s1607_s23 }
  0x65   : > { %p1279_p4 = por %p1278_p2, %p1277_p1 }
  0x66   : > { %p1275_p13 = pneg %p1274_p11 }
  0x67   : > { %p1281_p12 = por %p1280_p8, %p1279_p4 }
  0x69   : > { %p1282_p6 = pnand %p1281_p12, %p1275_p13 }
  0x6b   : > { %1285 = shalt.err (!%p1282_p6)
}
  0x6c   : > { %s1286_s13 = scalar_lea.vmem %s1613_s28, 128  ;;  %s1382_s11 = smov [#allocation3]  }
  0x6d   : > { %p1287_p0 = scmp.ne.s32.totalorder %s1613_s28, %s1286_s13  ;;  %s1291_s26 = sshll.u32 %s1382_s11, 4  ;;  %s1292_s26 = int_to_ptr.vmem [resolvable:$false] %s1291_s26 }
  0x6e   : > { %s1293_s25 = scalar_lea.vmem %s1292_s26, 256  ;;  %p1294_p11 = scmp.lt.s32.totalorder %s1613_s28, %s1292_s26 }
  0x6f   : > { %p1289_p3 = pnand %p1287_p0, %p1273_p9  ;;  %p1295_p1 = scmp.lt.s32.totalorder %s1293_s25, %s1286_s13 }
  0x71   : > { %p1290_p7 = pneg %p1289_p3  ;;  %p1296_p2 = por %p1295_p1, %p1294_p11 }
  0x73   : > { %p1297_p4 = pnand %p1296_p2, %p1290_p7 }
  0x75   : > { %1300 = shalt.err (!%p1297_p4)
}
  0x76   : > { %1132 = dma.hbm_to_vmem [thread:$0]  (!%p1609_p10), %s1607_s23, 128, %s1613_s28, %s346_s27  }
  0x77   : > { %p1793_p13 = scmp.ne.s32.totalorder %s1787_s22, 0 }
  0x78   : > { %s1643_s10 = sand.u32 (!%p1793_p13), 1, %s1367_s16   ;;  %p1794_p9 = scmp.ne.s32.totalorder (!%p1793_p13), %s1784_s20, 0 }
  0x79   : > { %365 = sbr.rel (%p1793_p13) target bundleno = 1004 (0x3ec), region = 60  ;;  %s861_s15 = sshll.u32 (!%p1793_p13), %s1643_s10, 3 }
  0x7a   : > { %s368_s14 = scalar_lea.sflag (!%p1793_p13), [#allocation4], %s1643_s10  ;;  %s1649_s29 = scalar_lea.vmem (!%p1793_p13), [#allocation3], %s861_s15 }
  0x80   : > { %1346 = dma.done.wait (%p1794_p9), %s368_s14, 128  }
  0x81   : > { %1348 = vsyncadd (%p1794_p9), %s368_s14, 4294967168  ;;  %p1795_p10 = scmp.eq.s32.totalorder %s1466_s0, 0 }
  0x83   : > { %1350 = dma.done.wait (%p1795_p10), [#allocation7], 4096   ;;  %p1796_p8 = pmov %p1795_p10 }
  0x85   : > { %1352 = vsyncadd (%p1796_p8), [#allocation7], 4294963200  ;;  %p1797_p12 = pmov %p1796_p8 }
  0x86   : > { %p1798_p6 = pmov %p1796_p8 }
  0x87   : > { %1354 = dma.done.wait (%p1797_p12), [#allocation10], 2048  }
  0x88   : > { %1356 = vsyncadd (%p1798_p6), [#allocation10], 4294965248  ;;  %v1383_v0 = vmov 0.0|0.0   ;;  %vm1384_vm0 = vmmov 0   ;;  %v1385_v1 = vmov 0.0   ;;  %v421_v2 = vld [vmem:[#allocation6] sm:$0xff] }
  0x89   : > { %1031 = vmatprep.subr.bf16.mxu0 %v1383_v0  ;;  %958 = vmatprep.mubr.msk.f32.mxu0 %vm1384_vm0, %v1385_v1  ;;  %v422_v3 = vld [vmem:[#allocation6 + $0x8] sm:$0xff]  ;;  %v423_v4 = vld [vmem:[#allocation6 + $0x10] sm:$0xff]  ;;  %v424_v6 = vld [vmem:[#allocation6 + $0x18] sm:$0xff]  ;;  %s731_s11 = sld [smem:[#allocation2]]  ;;  %s419_s20 = scalar_lea.vmem [#allocation11], %s861_s15 }
  0x8a   : > { %1055 = vmatprep.subr.bf16.mxu1 %v1383_v0  ;;  %993 = vmatprep.mubr.msk.f32.mxu1 %vm1384_vm0, %v1385_v1  ;;  %v1032_v5 = vpack.c.bf16 %v422_v3, %v421_v2  ;;  %v1035_v7 = vpack.c.bf16 %v424_v6, %v423_v4  ;;  %v425_v8 = vld [vmem:[#allocation6 + $0x20] sm:$0xff]  ;;  %v426_v9 = vld [vmem:[#allocation6 + $0x28] sm:$0xff]  ;;  %v427_v11 = vld [vmem:[#allocation6 + $0x30] sm:$0xff]  ;;  %s753_s22 = sshll.u32 %s419_s20, 4  ;;  %s1799_s24 = sld [smem:[#allocation18_spill]]  ;;  %s1724_s22 = int_to_ptr.vmem [resolvable:$true] %s753_s22 }
  0x8b   : > { %v1038_v10 = vpack.c.bf16 %v426_v9, %v425_v8  ;;  %v428_v12 = vld [vmem:[#allocation6 + $0x38] sm:$0xff]  ;;  %v429_v14 = vld [vmem:[#allocation6 + $0x40] sm:$0xff]  ;;  %v430_v15 = vld [vmem:[#allocation6 + $0x48] sm:$0xff]  ;;  %s740_s30 = scalar_lea.sflag [#allocation5], %s1643_s10  ;;  %s1301_s13 = scalar_lea.vmem %s1724_s22, 128 }
  0x8c   : > { %1033 = vmatpush3.bf16.msra.mxu0 %v1032_v5  ;;  %v1041_v13 = vpack.c.bf16 %v428_v12, %v427_v11  ;;  %v1044_v16 = vpack.c.bf16 %v430_v15, %v429_v14  ;;  %v431_v17 = vld [vmem:[#allocation6 + $0x50] sm:$0xff]  ;;  %v432_v18 = vld [vmem:[#allocation6 + $0x58] sm:$0xff]  ;;  %v433_v20 = vld [vmem:[#allocation6 + $0x60] sm:$0xff]  ;;  %p1302_p0 = scmp.ne.s32.totalorder %s1724_s22, %s1301_s13 }
  0x8d   : > { %1034 = vmatprep.subr.bf16.mxu0 %v1383_v0  ;;  %v1047_v19 = vpack.c.bf16 %v432_v18, %v431_v17  ;;  %v434_v21 = vld [vmem:[#allocation6 + $0x68] sm:$0xff]  ;;  %v435_v23 = vld [vmem:[#allocation6 + $0x70] sm:$0xff]  ;;  %v436_v24 = vld [vmem:[#allocation6 + $0x78] sm:$0xff] }
  0x8e   : > { %v1050_v22 = vpack.c.bf16 %v434_v21, %v433_v20  ;;  %v1053_v25 = vpack.c.bf16 %v436_v24, %v435_v23  ;;  %v1675_v26 = vld [vmem:[%s1649_s29] sm:$0xff]  ;;  %v544_v27 = vld [vmem:[#allocation8] sm:$0xff]  ;;  %v545_v28 = vld [vmem:[#allocation8 + $0x8] sm:$0xff]  ;;  %s872_s29 = sshll.u32 %s1466_s0, 7  ;;  %p1303_p3 = pnand %p1302_p0, %p1598_p5 }
  0x8f   : > { %v1056_v29 = vpack.c.bf16 %v545_v28, %v544_v27  ;;  %v866_v30 = vld [vmem:[%s1768_s3] ss:$0 sm:$0xff]  ;;  %v547_v36 = vld [vmem:[#allocation8 + $0x18] sm:$0xff]  ;;  %v548_v38 = vld [vmem:[#allocation8 + $0x20] sm:$0xff]  ;;  %s734_s26 = ssub.f32 1.0, %s731_s11  ;;  %s1386_s0 = smov [#allocation11]  }
  0x90   : > { %1036 = vmatpush3.bf16.msra.mxu0 %v1035_v7  ;;  %v546_v35 = vld [vmem:[#allocation8 + $0x10] sm:$0xff]  ;;  %v549_v39 = vld [vmem:[#allocation8 + $0x28] sm:$0xff]  ;;  %v551_v42 = vld [vmem:[#allocation8 + $0x38] sm:$0xff]  ;;  %s1722_s27 = scalar_lea.hbm %s1799_s24, %s872_s29  ;;  %p1304_p7 = pneg %p1303_p3 }
  0x91   : > { %1037 = vmatprep.subr.bf16.mxu0 %v1383_v0  ;;  %1057 = vmatpush3.bf16.msra.mxu1 %v1056_v29  ;;  %v1059_v37 = vpack.c.bf16 %v547_v36, %v546_v35  ;;  %v1062_v40 = vpack.c.bf16 %v549_v39, %v548_v38  ;;  %v550_v41 = vld [vmem:[#allocation8 + $0x30] sm:$0xff]  ;;  %v552_v44 = vld [vmem:[#allocation8 + $0x40] sm:$0xff]  ;;  %v553_v45 = vld [vmem:[#allocation8 + $0x48] sm:$0xff]  ;;  %s1305_s15 = sshll.u32 %s1386_s0, 4  ;;  %s1306_s15 = int_to_ptr.vmem [resolvable:$false] %s1305_s15 }
  0x92   : > { %1058 = vmatprep.subr.bf16.mxu1 %v1383_v0  ;;  %v1065_v43 = vpack.c.bf16 %v551_v42, %v550_v41  ;;  %v1068_v46 = vpack.c.bf16 %v553_v45, %v552_v44  ;;  %v554_v47 = vld [vmem:[#allocation8 + $0x50] sm:$0xff]  ;;  %v555_v48 = vld [vmem:[#allocation8 + $0x58] sm:$0xff]  ;;  %v556_v50 = vld [vmem:[#allocation8 + $0x60] sm:$0xff]  ;;  %p1308_p11 = scmp.lt.s32.totalorder %s1724_s22, %s1306_s15 }
  0x93   : > { %v1071_v49 = vpack.c.bf16 %v555_v48, %v554_v47  ;;  %v557_v51 = vld [vmem:[#allocation8 + $0x68] sm:$0xff]  ;;  %v558_v53 = vld [vmem:[#allocation8 + $0x70] sm:$0xff]  ;;  %v559_v54 = vld [vmem:[#allocation8 + $0x78] sm:$0xff] }
  0x94   : > { %1039 = vmatpush3.bf16.msra.mxu0 %v1038_v10  ;;  %v1074_v52 = vpack.c.bf16 %v557_v51, %v556_v50  ;;  %v1077_v55 = vpack.c.bf16 %v559_v54, %v558_v53  ;;  %v638_v56 = vld [vmem:[#allocation9] sm:$0xff]  ;;  %v639_v57 = vld [vmem:[#allocation9 + $0x8] sm:$0xff]  ;;  %v640_v58 = vld [vmem:[#allocation9 + $0x10] sm:$0xff] }
  0x95   : > { %1040 = vmatprep.subr.bf16.mxu0 %v1383_v0  ;;  %1060 = vmatpush3.bf16.msra.mxu1 %v1059_v37  ;;  %v1080_v59 = vpack.c.bf16 %v639_v57, %v638_v56  ;;  %v641_v60 = vld [vmem:[#allocation9 + $0x18] sm:$0xff]  ;;  %v642_v62 = vld [vmem:[#allocation9 + $0x20] sm:$0xff]  ;;  %v643_v63 = vld [vmem:[#allocation9 + $0x28] sm:$0xff]  ;;  %v735_v37 = vstv %s734_s26 }
  0x96   : > { %1061 = vmatprep.subr.bf16.mxu1 %v1383_v0  ;;  %v1083_v61 = vpack.c.bf16 %v641_v60, %v640_v58  ;;  %v644_v2 = vld [vmem:[#allocation9 + $0x30] sm:$0xff]  ;;  %v645_v3 = vld [vmem:[#allocation9 + $0x38] sm:$0xff]  ;;  %v646_v5 = vld [vmem:[#allocation9 + $0x40] sm:$0xff]  ;;  %v736_v41 = vmul.f32 %v735_v37, %v1675_v26 }
  0x97   : > { %v1089_v4 = vpack.c.bf16 %v645_v3, %v644_v2  ;;  %v647_v6 = vld [vmem:[#allocation9 + $0x48] sm:$0xff]  ;;  %v648_v8 = vld [vmem:[#allocation9 + $0x50] sm:$0xff]  ;;  %v649_v9 = vld [vmem:[#allocation9 + $0x58] sm:$0xff] }
  0x98   : > { %1042 = vmatpush3.bf16.msra.mxu0 %v1041_v13  ;;  %v1092_v7 = vpack.c.bf16 %v647_v6, %v646_v5  ;;  %v1095_v10 = vpack.c.bf16 %v649_v9, %v648_v8  ;;  %v650_v11 = vld [vmem:[#allocation9 + $0x60] sm:$0xff]  ;;  %v651_v12 = vld [vmem:[#allocation9 + $0x68] sm:$0xff]  ;;  %v867_v24 = vld [vmem:[%s1769_s4] ss:$0 sm:$0xff] }
  0x99   : > { %1043 = vmatprep.subr.bf16.mxu0 %v1383_v0  ;;  %1063 = vmatpush3.bf16.msra.mxu1 %v1062_v40  ;;  %v1098_v13 = vpack.c.bf16 %v651_v12, %v650_v11  ;;  %v652_v29 = vld [vmem:[#allocation9 + $0x70] sm:$0xff]  ;;  %v732_v40 = vstv %s731_s11  ;;  %s1307_s11 = scalar_lea.vmem %s1306_s15, 256 }
  0x9a   : > { %1064 = vmatprep.subr.bf16.mxu1 %v1383_v0  ;;  %v870_v38 = vld [vmem:[%s1774_s9] ss:$0 sm:$0xff]  ;;  %p1309_p1 = scmp.lt.s32.totalorder %s1307_s11, %s1301_s13 }
  0x9c   : > { %1045 = vmatpush3.bf16.msra.mxu0 %v1044_v16  ;;  %p1310_p2 = por %p1309_p1, %p1308_p11 }
  0x9d   : > { %1046 = vmatprep.subr.bf16.mxu0 %v1383_v0  ;;  %1066 = vmatpush3.bf16.msra.mxu1 %v1065_v43 }
  0x9e   : > { %1067 = vmatprep.subr.bf16.mxu1 %v1383_v0  ;;  %p1311_p4 = pnand %p1310_p2, %p1304_p7 }
  0xa0   : > { %1048 = vmatpush3.bf16.msra.mxu0 %v1047_v19 }
  0xa1   : > { %1049 = vmatprep.subr.bf16.mxu0 %v1383_v0  ;;  %1069 = vmatpush3.bf16.msra.mxu1 %v1068_v46 }
  0xa2   : > { %1070 = vmatprep.subr.bf16.mxu1 %v1383_v0 }
  0xa4   : > { %1051 = vmatpush3.bf16.msra.mxu0 %v1050_v22 }
  0xa5   : > { %1052 = vmatprep.subr.bf16.mxu0 %v1383_v0  ;;  %1072 = vmatpush3.bf16.msra.mxu1 %v1071_v49 }
  0xa6   : > { %1073 = vmatprep.subr.bf16.mxu1 %v1383_v0 }
  0xa8   : > { %1054 = vmatpush3.bf16.msra.mxu0 %v1053_v25 }
  0xa9   : > { %1079 = vmatprep.subr.bf16.mxu0 %v1383_v0  ;;  %1075 = vmatpush3.bf16.msra.mxu1 %v1074_v52 }
  0xaa   : > { %1076 = vmatprep.subr.bf16.mxu1 %v1383_v0 }
  0xab   : > { %959 = vmatmul.mubr.f32.vlgmr.msra.gmra.mrb[0].mxu0 %v1675_v26 }
  0xac   : > { %1028 = vmatprep.mubr.msk.f32.mxu0 %vm1384_vm0, %v1385_v1  ;;  %1081 = vmatpush3.bf16.msra.mxu0 %v1080_v59  ;;  %v1086_v1 = vpack.c.bf16 %v643_v63, %v642_v62 }
  0xad   : > { %1078 = vmatpush3.bf16.msra.mxu1 %v1077_v55  ;;  %1082 = vmatprep.subr.bf16.mxu0 %v1383_v0 }
  0xb0   : > { %1084 = vmatpush3.bf16.msra.mxu0 %v1083_v61 }
  0xb1   : > { %1085 = vmatprep.subr.bf16.mxu0 %v1383_v0 }
  0xb4   : > { %1087 = vmatpush3.bf16.msra.mxu0 %v1086_v1 }
  0xb5   : > { %1088 = vmatprep.subr.bf16.mxu0 %v1383_v0 }
  0xb8   : > { %1090 = vmatpush3.bf16.msra.mxu0 %v1089_v4 }
  0xb9   : > { %1091 = vmatprep.subr.bf16.mxu0 %v1383_v0 }
  0xbc   : > { %1093 = vmatpush3.bf16.msra.mxu0 %v1092_v7 }
  0xbd   : > { %1094 = vmatprep.subr.bf16.mxu0 %v1383_v0 }
  0xc0   : > { %1096 = vmatpush3.bf16.msra.mxu0 %v1095_v10 }
  0xc1   : > { %1097 = vmatprep.subr.bf16.mxu0 %v1383_v0 }
  0xc4   : > { %1099 = vmatpush3.bf16.msra.mxu0 %v1098_v13 }
  0xc5   : > { %1100 = vmatprep.subr.bf16.mxu0 %v1383_v0  ;;  %v868_v0 = vld [vmem:[%s1770_s5] ss:$0 sm:$0xff] }
 0x17e   : > { %v510_v31 = vpop.f32.mrb[0].mxu0 }
 0x17f   : > { %v1684_v32 = vadd.f32 %v866_v30, %v510_v31  ;;  %v960_v33 = vpop.f32.mrb[1].mxu0  ;;  %v653_v30 = vld [vmem:[#allocation9 + $0x78] sm:$0xff] }
 0x180   : > { %v1101_v31 = vpack.c.bf16 %v653_v30, %v652_v29 }
 0x181   : > { %514 = vadd.xlane.f32.xlu0 %v1684_v32  ;;  %v516_v34 = vmul.f32 %v1684_v32, %v1684_v32 }
 0x182   : > { %1102 = vmatpush3.bf16.msra.mxu0 %v1101_v31 }
 0x185   : > { %517 = vadd.xlane.f32.xlu0 %v516_v34 }
 0x20e   : > { %v515_v14 = vpop.xlane.xlu0 %514 }
 0x20f   : > { %v519_v15 = vmul.f32 0.03125, %v515_v14 }
 0x211   : > { %v521_v17 = vmul.f32 %v519_v15, %v519_v15  ;;  %v524_v22 = vsub.f32 %v1684_v32, %v519_v15  ;;  %v869_v32 = vld [vmem:[%s1772_s7] ss:$0 sm:$0xff] }
 0x212   : > { %v518_v16 = vpop.xlane.xlu0 %517 }
 0x213   : > { %v520_v18 = vmul.f32 0.03125, %v518_v16 }
 0x215   : > { %v522_v19 = vsub.f32 %v520_v18, %v521_v17 }
 0x217   : > { %v523_v20 = vmax.f32 %v522_v19, 0.0 }
 0x219   : > { %v525_v21 = vadd.f32 1e-05, %v523_v20 }
 0x21b   : > { %1185 = vrsqrt.f32 %v525_v21 }
 0x225   : > { %v1186_v23 = vpop.eup %1185 }
 0x226   : > { %v527_v25 = vmul.f32 %v1186_v23, %v524_v22 }
 0x228   : > { %v535_v27 = vmul.f32 %v867_v24, %v527_v25 }
 0x22a   : > { %v543_v28 = vadd.f32 %v868_v0, %v535_v27 }
 0x22c   : > { %994 = vmatmul.mubr.f32.vlgmr.msra.gmra.mrb[0].mxu1 %v543_v28 }
 0x2ff   : > { %v633_v33 = vpop.f32.mrb[0].mxu1 }
 0x300   : > { %v634_v34 = vadd.f32 %v869_v32, %v633_v33  ;;  %v995_v35 = vpop.f32.mrb[1].mxu1 }
 0x302   : > { %v637_v36 = vmax.f32 %v634_v34, 0.0 }
 0x304   : > { %1029 = vmatmul.mubr.f32.vlgmr.msra.gmra.mrb[2].mxu0 %v637_v36 }
 0x3d7   : > { %v727_v39 = vpop.f32.mrb[2].mxu0 }
 0x3d8   : > { %v728_v42 = vadd.f32 %v870_v38, %v727_v39  ;;  %v1030_v43 = vpop.f32.mrb[3].mxu0 }
 0x3da   : > { %v733_v44 = vmul.f32 %v732_v40, %v728_v42 }
 0x3dc   : > { %v737_v45 = vadd.f32 %v736_v41, %v733_v44 }
 0x3de   : > { %738 = vst [vmem:[%s419_s20] sm:$0xff] %v737_v45 }
 0x3df   : > { %1314 = shalt.err (!%p1311_p4)
}
 0x3e0   : > { %s1315_s10 = scalar_lea.hbm %s1722_s27, 128  ;;  %s1319_s14 = scalar_lea.hbm %s1799_s24, 384 }
 0x3e1   : > { %p1316_p13 = scmp.ne.s32.totalorder %s1722_s27, %s1315_s10  ;;  %p1320_p8 = scmp.lt.u32.totalorder %s1722_s27, %s1799_s24 }
 0x3e2   : > { %p1321_p12 = scmp.lt.u32.totalorder %s1319_s14, %s1315_s10  ;;  %p1323_p0 = scmp.lt.u32.totalorder %s1315_s10, %s1722_s27 }
 0x3e3   : > { %p1317_p9 = pnand %p1316_p13, %p1598_p5 }
 0x3e4   : > { %p1322_p6 = por %p1321_p12, %p1320_p8 }
 0x3e5   : > { %p1318_p10 = pneg %p1317_p9 }
 0x3e6   : > { %p1324_p3 = por %p1323_p0, %p1322_p6 }
 0x3e8   : > { %p1325_p7 = pnand %p1324_p3, %p1318_p10 }
 0x3ea   : > { %1328 = shalt.err (!%p1325_p7)
}
 0x3eb   : > { %1117 = dma.vmem_to_hbm [thread:$0]  (%p1598_p5), %s1724_s22, 128, %s1722_s27, %s740_s30  }
 0x3ec PF: > { %s1800_s23 = sld [smem:[#allocation16_spill]]  ;;  %s1801_s28 = sld [smem:[#allocation17_spill]] }
 0x3ed   : > { %p1144_p11 = scmp.ge.s32.totalorder %s1375_s18, 2 }
 0x3f2   : > { %s765_s13 = sand.u32 1, %s1800_s23   ;;  %p1802_p1 = scmp.ne.s32.totalorder %s1801_s28, 0 }
 0x3f3   : > { %s766_s0 = scalar_lea.sflag [#allocation5], %s765_s13 }
 0x3f4   : > { %p1134_p2 = pnand %p1144_p11, %p1802_p1 }
 0x3f6   : > { %1358 = dma.done.wait (!%p1134_p2), %s766_s0, 128  }
 0x3f7   : > { %1360 = vsyncadd (!%p1134_p2), %s766_s0, 4294967168  ;;  %p26_p4 = scmp.ge.s32.totalorder %s1584_s19, 5   ;;  %s1803_s15 = smov %s1367_s16 }
 0x3f8   : > { %s1804_s16 = smov %s1371_s17  ;;  %s1805_s17 = smov %s1594_s21 }
 0x3f9   : > { %s1806_s18 = smov %s1584_s19  ;;  %28 = sbr.rel (!%p26_p4) target bundleno = 10 (0xa), region = 117 }
 0x400   :  { %771 = vsyncpa [#allocation4], 1 }
 0x401   :  { %773 = vsyncpa [#allocation4 + $0x1], 1 }
 0x402   :  { %774 = vsyncpa [#allocation7], 1 }
 0x403   :  { %775 = vsyncpa [#allocation10], 1 }
 0x404   :  { %776 = vsyncpa [#allocation5], 1 }
 0x405   :  { %778 = vsyncpa [#allocation5 + $0x1], 1 }

</bundles_post_ra>
